<compile_context>
chip_gen: v6e
topology: v6e:2x2x1
jax: 0.10.0
libtpu: 0.0.40
codegen_flags: <defaults>
</compile_context>

<pallas_src>
import functools

import jax
import jax.numpy as jnp
from jax.experimental import pallas as pl
from jax.experimental.pallas import tpu as pltpu

BN_EPS = 1e-5
LEAKY_SLOPE = 0.01          # PyTorch nn.LeakyReLU() default negative_slope
STAT_ROWS = 8               # sublane-aligned rows per per-tile stats block


def _round_up(x, m):
    return ((x + m - 1) // m) * m


# ---------------------------------------------------------------------------
# Pass A: fused im2col conv (MXU) + per-tile BN partial sums
# ---------------------------------------------------------------------------
def _conv_stats_kernel(x_lo_ref, x_hi_ref, w_ref, y_ref, stats_ref, *,
                       kh, kw, stride, th, w_out, h_out, h_out_pad):
    """x_lo_ref: (1, th*stride, W_p, C_in)   rows owned by this tile
       x_hi_ref: (1, halo,      W_p, C_in)   halo rows just below the tile
       w_ref:    (kh*kw, C_in, C_out)        resident weights
       y_ref:    (1, 1, th*w_out, C_out)     conv output tile
       stats_ref:(1, 1, 8, C_out)            row0 = sum, row1 = sum of squares"""
    c_in = x_lo_ref.shape[-1]
    c_out = w_ref.shape[-1]
    tm = th * w_out

    x_tile = jnp.concatenate([x_lo_ref[0], x_hi_ref[0]], axis=0)

    acc = jnp.zeros((tm, c_out), jnp.float32)
    for ki in range(kh):
        for kj in range(kw):
            if stride == 1:
                slab = x_tile[ki:ki + th, kj:kj + w_out, :]
            else:
                # TODO(synk): strided-slice path (stride > 1) is untested on HW.
                slab = jax.lax.slice(
                    x_tile, (ki, kj, 0),
                    (ki + stride * (th - 1) + 1,
                     kj + stride * (w_out - 1) + 1, c_in),
                    (stride, stride, 1))
            slab = slab.reshape(tm, c_in)
            acc = acc + jnp.dot(slab, w_ref[ki * kw + kj],
                                preferred_element_type=jnp.float32)

    y_ref[0, 0] = acc.astype(y_ref.dtype)

    if h_out_pad > h_out:
        # Exclude padded output rows (present only when th does not divide
        # H_out) from the statistics; they may read leftover real input rows.
        h = pl.program_id(1)
        row = jax.lax.broadcasted_iota(jnp.int32, (tm, 1), 0)
        n_valid = jnp.minimum(h_out - h * th, th) * w_out
        acc = jnp.where(row < n_valid, acc, 0.0)

    col_sum = jnp.sum(acc, axis=0, keepdims=True)
    col_ssq = jnp.sum(acc * acc, axis=0, keepdims=True)
    stats_ref[0, 0] = jnp.concatenate(
        [col_sum, col_ssq, jnp.zeros((STAT_ROWS - 2, c_out), jnp.float32)],
        axis=0)


# ---------------------------------------------------------------------------
# Pass B: normalize (training-mode BN) + affine + LeakyReLU  (pure streaming)
# ---------------------------------------------------------------------------
def _bn_lrelu_kernel(y_ref, scale_ref, shift_ref, o_ref):
    z = y_ref[0, 0].astype(jnp.float32) * scale_ref[...] + shift_ref[...]
    o_ref[0, 0] = jnp.maximum(z, LEAKY_SLOPE * z).astype(o_ref.dtype)


# ---------------------------------------------------------------------------
# Wrapper
# ---------------------------------------------------------------------------
def basic_conv_forward(x_nchw, weight_oihw, gamma, beta, *, stride=1, padding=1,
                       tile_h=32, matmul_dtype=jnp.bfloat16,
                       y_dtype=jnp.bfloat16, nchw_output=True):
    """BasicConv forward (deconv=False, is_3d=False, bn=True, relu=True).

    x_nchw:      (N, C_in, H, W)
    weight_oihw: (C_out, C_in, kh, kw)   Conv2d weights (bias=False)
    gamma, beta: (C_out,)                BatchNorm2d affine parameters
    returns      (N, C_out, H_out, W_out) float32 (NHWC when nchw_output=False)

    matmul_dtype / y_dtype default to bf16 (v6e/v7x MXU-native, halves HBM
    traffic); pass jnp.float32 for strict f32 parity (conservative on v5e).
    """
    N, C_in, H, W = x_nchw.shape
    C_out, c_in_w, kh, kw = weight_oihw.shape
    assert c_in_w == C_in, (c_in_w, C_in)

    H_out = (H + 2 * padding - kh) // stride + 1
    W_out = (W + 2 * padding - kw) // stride + 1
    assert H_out > 0 and W_out > 0

    # ---- tiling --------------------------------------------------------------
    th = max(8, min(_round_up(tile_h, 8), _round_up(H_out, 8)))  # 8 | th => 8 | TM
    n_h = -(-H_out // th)
    H_out_pad = n_h * th
    xbh = th * stride                           # input rows owned by one tile
    halo_need = max(kh - stride, 1)
    assert halo_need <= xbh, "tile_h too small for this kernel size"
    halo = next(d for d in range(halo_need, xbh + 1) if xbh % d == 0)
    TM = th * W_out                             # output rows per tile (mult of 8)
    M = N * H_out * W_out                       # real element count for BN stats

    W_p = W + 2 * padding
    H_x = (n_h + 1) * xbh                       # divisible by both xbh and halo
    bottom = H_x - H - padding
    assert bottom >= 0

    # ---- wrapper-side glue (layout only) -------------------------------------
    x = jnp.transpose(x_nchw, (0, 2, 3, 1)).astype(matmul_dtype)        # NHWC
    x_p = jnp.pad(x, ((0, 0), (padding, bottom), (padding, padding), (0, 0)))

    # (C_out, C_in, kh, kw) -> (kh*kw, C_in, C_out); tap index t = ki*kw + kj.
    w_taps = jnp.transpose(weight_oihw, (2, 3, 1, 0)).reshape(
        kh * kw, C_in, C_out).astype(matmul_dtype)

    grid = (N, n_h)
    tiles = N * n_h
    y_isz = jnp.dtype(y_dtype).itemsize
    mm_isz = jnp.dtype(matmul_dtype).itemsize

    # ---- Pass A: fused conv + per-tile BN partial sums ------------------------
    cost_a = pl.CostEstimate(
        flops=int(2 * tiles * TM * C_in * kh * kw * C_out + 3 * tiles * TM * C_out),
        transcendentals=0,
        bytes_accessed=int(tiles * (xbh + halo) * W_p * C_in * mm_isz
                           + kh * kw * C_in * C_out * mm_isz
                           + tiles * TM * C_out * y_isz
                           + tiles * STAT_ROWS * C_out * 4))

    conv_kernel = functools.partial(
        _conv_stats_kernel, kh=kh, kw=kw, stride=stride, th=th,
        w_out=W_out, h_out=H_out, h_out_pad=H_out_pad)

    y, stats = pl.pallas_call(
        conv_kernel,
        grid=grid,
        in_specs=[
            # rows owned by this tile
            pl.BlockSpec((1, xbh, W_p, C_in), lambda n, h: (n, h, 0, 0)),
            # halo rows just below the tile (same array, small block)
            pl.BlockSpec((1, halo, W_p, C_in),
                         lambda n, h: (n, (h + 1) * (xbh // halo), 0, 0)),
            # resident weights (constant index -> fetched once)
            pl.BlockSpec((kh * kw, C_in, C_out), lambda n, h: (0, 0, 0)),
        ],
        out_specs=[
            pl.BlockSpec((1, 1, TM, C_out), lambda n, h: (n, h, 0, 0)),
            pl.BlockSpec((1, 1, STAT_ROWS, C_out), lambda n, h: (n, h, 0, 0)),
        ],
        out_shape=[
            jax.ShapeDtypeStruct((N, n_h, TM, C_out), y_dtype),
            jax.ShapeDtypeStruct((N, n_h, STAT_ROWS, C_out), jnp.float32),
        ],
        compiler_params=pltpu.CompilerParams(
            dimension_semantics=("parallel", "parallel")),      # v7x megacore
        cost_estimate=cost_a,
    )(x_p, x_p, w_taps)

    # ---- tiny cross-tile reduction + BN scale/shift (O(tiles*C_out)) ----------
    col_sum = jnp.sum(stats[:, :, 0, :], axis=(0, 1))
    col_ssq = jnp.sum(stats[:, :, 1, :], axis=(0, 1))
    mean = col_sum / M
    var = jnp.maximum(col_ssq / M - mean * mean, 0.0)           # biased variance
    scale = gamma.astype(jnp.float32) * jax.lax.rsqrt(var + BN_EPS)
    shift = beta.astype(jnp.float32) - mean * scale

    # ---- Pass B: normalize + affine + LeakyReLU -------------------------------
    cost_b = pl.CostEstimate(
        flops=int(4 * tiles * TM * C_out),
        transcendentals=0,
        bytes_accessed=int(tiles * TM * C_out * (y_isz + 4) + 2 * C_out * 4))

    out4 = pl.pallas_call(
        _bn_lrelu_kernel,
        grid=grid,
        in_specs=[
            pl.BlockSpec((1, 1, TM, C_out), lambda n, h: (n, h, 0, 0)),
            pl.BlockSpec((1, C_out), lambda n, h: (0, 0)),       # scale, resident
            pl.BlockSpec((1, C_out), lambda n, h: (0, 0)),       # shift, resident
        ],
        out_specs=pl.BlockSpec((1, 1, TM, C_out), lambda n, h: (n, h, 0, 0)),
        out_shape=jax.ShapeDtypeStruct((N, n_h, TM, C_out), jnp.float32),
        compiler_params=pltpu.CompilerParams(
            dimension_semantics=("parallel", "parallel")),
        cost_estimate=cost_b,
    )(y, scale.reshape(1, C_out), shift.reshape(1, C_out))

    out = out4.reshape(N, H_out_pad, W_out, C_out)[:, :H_out]
    if nchw_output:
        out = jnp.transpose(out, (0, 3, 1, 2))
    return out


# ---------------------------------------------------------------------------
# Pure-JAX reference (training-mode BN, matches PyTorch semantics)
# ---------------------------------------------------------------------------
def _reference(x_nchw, weight_oihw, gamma, beta, *, stride=1, padding=1):
    y = jax.lax.conv_general_dilated(
        x_nchw, weight_oihw,
        window_strides=(stride, stride),
        padding=((padding, padding), (padding, padding)),
        dimension_numbers=("NCHW", "OIHW", "NCHW"))
    mean = jnp.mean(y, axis=(0, 2, 3), keepdims=True)
    var = jnp.mean((y - mean) ** 2, axis=(0, 2, 3), keepdims=True)
    y = (y - mean) * jax.lax.rsqrt(var + BN_EPS)
    y = gamma.reshape(1, -1, 1, 1) * y + beta.reshape(1, -1, 1, 1)
    return jnp.where(y >= 0, y, LEAKY_SLOPE * y)


if __name__ == "__main__":
    key = jax.random.PRNGKey(0)
    k_x, k_w, k_g, k_b = jax.random.split(key, 4)

    N, C_in, H, W = 2, 4, 16, 16
    C_out, kh, kw = 8, 3, 3

    x = jax.random.normal(k_x, (N, C_in, H, W), dtype=jnp.float32)
    # Conv2d has bias=False in BasicConv; deterministic synthetic weights.
    weight = jax.random.normal(k_w, (C_out, C_in, kh, kw), dtype=jnp.float32) * 0.1
    # Non-trivial BN affine params to exercise the full scale/shift path.
    gamma = 1.0 + 0.1 * jax.random.normal(k_g, (C_out,), dtype=jnp.float32)
    beta = 0.1 * jax.random.normal(k_b, (C_out,), dtype=jnp.float32)

    ref = _reference(x, weight, gamma, beta, stride=1, padding=1)

    # Strict f32 path; tile_h=8 -> two H-tiles per image so the grid, the halo
    # fetch across a real tile boundary, and the partial-sum reduction are all
    # exercised.
    out = basic_conv_forward(x, weight, gamma, beta, stride=1, padding=1,
                             tile_h=8, matmul_dtype=jnp.float32,
                             y_dtype=jnp.float32)
    out = jax.block_until_ready(out)
    assert out.shape == (N, C_out, H, W), out.shape
    err = float(jnp.max(jnp.abs(out - ref)))
    assert jnp.allclose(out, ref, atol=1e-3, rtol=1e-3), err

    # Default fast path: bf16 MXU inputs + bf16 y intermediate (v6e/v7x).
    out_fast = basic_conv_forward(x, weight, gamma, beta, stride=1, padding=1,
                                  tile_h=16)
    out_fast = jax.block_until_ready(out_fast)
    err_fast = float(jnp.max(jnp.abs(out_fast - ref)))
    assert jnp.allclose(out_fast, ref, atol=1e-1, rtol=1e-1), err_fast

    print("KERNEL_OK")
</pallas_src>

<mosaic_0001>
module attributes {stable_mosaic.version = 11 : i64} {
  func.func @_conv_stats_kernel(%arg0: i32, %arg1: i32, %arg2: memref<1x8x18x4xf32, #tpu.memory_space<vmem>>, %arg3: memref<1x2x18x4xf32, #tpu.memory_space<vmem>>, %arg4: memref<9x4x8xf32, #tpu.memory_space<vmem>>, %arg5: memref<1x1x128x8xf32, #tpu.memory_space<vmem>>, %arg6: memref<1x1x8x8xf32, #tpu.memory_space<vmem>>) attributes {dimension_semantics = [#tpu.dimension_semantics<parallel>, #tpu.dimension_semantics<parallel>], iteration_bounds = array<i64: 2, 2>, scalar_prefetch = 0 : i64, scratch_operands = 0 : i64, tpu.core_type = #tpu.core_type<tc>, window_params = [{transform_indices = @transform_0, window_bounds = array<i64: 1, 8, 18, 4>}, {transform_indices = @transform_1, window_bounds = array<i64: 1, 2, 18, 4>}, {pipeline_mode = #tpu.pipeline_mode<synchronous>, transform_indices = @transform_2, window_bounds = array<i64: 9, 4, 8>}, {transform_indices = @transform_3, window_bounds = array<i64: 1, 1, 128, 8>}, {transform_indices = @transform_4, window_bounds = array<i64: 1, 1, 8, 8>}]} {
    %c0 = arith.constant 0 : index
    %c0_0 = arith.constant 0 : index
    %c0_1 = arith.constant 0 : index
    %c0_2 = arith.constant 0 : index
    %0 = vector.load %arg2[%c0, %c0_0, %c0_1, %c0_2] : memref<1x8x18x4xf32, #tpu.memory_space<vmem>>, vector<1x8x18x4xf32>
    %1 = vector.shape_cast %0 : vector<1x8x18x4xf32> to vector<8x18x4xf32>
    %c0_3 = arith.constant 0 : index
    %c0_4 = arith.constant 0 : index
    %c0_5 = arith.constant 0 : index
    %c0_6 = arith.constant 0 : index
    %2 = vector.load %arg3[%c0_3, %c0_4, %c0_5, %c0_6] : memref<1x2x18x4xf32, #tpu.memory_space<vmem>>, vector<1x2x18x4xf32>
    %3 = vector.shape_cast %2 : vector<1x2x18x4xf32> to vector<2x18x4xf32>
    %4 = tpu.concatenate %1, %3 in 0 : vector<8x18x4xf32>, vector<2x18x4xf32> -> vector<10x18x4xf32>
    %cst = arith.constant 0.000000e+00 : f32
    %5 = vector.broadcast %cst : f32 to vector<128x8xf32>
    %6 = vector.extract_strided_slice %4 {offsets = [0, 0, 0], sizes = [8, 16, 4], strides = [1, 1, 1]} : vector<10x18x4xf32> to vector<8x16x4xf32>
    %7 = vector.shape_cast %6 : vector<8x16x4xf32> to vector<128x4xf32>
    %c0_7 = arith.constant 0 : index
    %c0_8 = arith.constant 0 : index
    %c0_9 = arith.constant 0 : index
    %8 = vector.load %arg4[%c0_7, %c0_8, %c0_9] : memref<9x4x8xf32, #tpu.memory_space<vmem>>, vector<1x4x8xf32>
    %9 = vector.shape_cast %8 : vector<1x4x8xf32> to vector<4x8xf32>
    %cst_10 = arith.constant dense<0.000000e+00> : vector<128x8xf32>
    %10 = tpu.matmul %7, %9, %cst_10 {dimension_numbers = #tpu.dot_dimension_numbers<[1], [0], [0], [1], [0, 0, 1, 1], [], []>} : vector<128x4xf32>, vector<4x8xf32>, vector<128x8xf32> -> vector<128x8xf32>
    %11 = arith.addf %5, %10 : vector<128x8xf32>
    %12 = vector.extract_strided_slice %4 {offsets = [0, 1, 0], sizes = [8, 16, 4], strides = [1, 1, 1]} : vector<10x18x4xf32> to vector<8x16x4xf32>
    %13 = vector.shape_cast %12 : vector<8x16x4xf32> to vector<128x4xf32>
    %c1 = arith.constant 1 : index
    %c0_11 = arith.constant 0 : index
    %c0_12 = arith.constant 0 : index
    %14 = vector.load %arg4[%c1, %c0_11, %c0_12] : memref<9x4x8xf32, #tpu.memory_space<vmem>>, vector<1x4x8xf32>
    %15 = vector.shape_cast %14 : vector<1x4x8xf32> to vector<4x8xf32>
    %cst_13 = arith.constant dense<0.000000e+00> : vector<128x8xf32>
    %16 = tpu.matmul %13, %15, %cst_13 {dimension_numbers = #tpu.dot_dimension_numbers<[1], [0], [0], [1], [0, 0, 1, 1], [], []>} : vector<128x4xf32>, vector<4x8xf32>, vector<128x8xf32> -> vector<128x8xf32>
    %17 = arith.addf %11, %16 : vector<128x8xf32>
    %18 = vector.extract_strided_slice %4 {offsets = [0, 2, 0], sizes = [8, 16, 4], strides = [1, 1, 1]} : vector<10x18x4xf32> to vector<8x16x4xf32>
    %19 = vector.shape_cast %18 : vector<8x16x4xf32> to vector<128x4xf32>
    %c2 = arith.constant 2 : index
    %c0_14 = arith.constant 0 : index
    %c0_15 = arith.constant 0 : index
    %20 = vector.load %arg4[%c2, %c0_14, %c0_15] : memref<9x4x8xf32, #tpu.memory_space<vmem>>, vector<1x4x8xf32>
    %21 = vector.shape_cast %20 : vector<1x4x8xf32> to vector<4x8xf32>
    %cst_16 = arith.constant dense<0.000000e+00> : vector<128x8xf32>
    %22 = tpu.matmul %19, %21, %cst_16 {dimension_numbers = #tpu.dot_dimension_numbers<[1], [0], [0], [1], [0, 0, 1, 1], [], []>} : vector<128x4xf32>, vector<4x8xf32>, vector<128x8xf32> -> vector<128x8xf32>
    %23 = arith.addf %17, %22 : vector<128x8xf32>
    %24 = vector.extract_strided_slice %4 {offsets = [1, 0, 0], sizes = [8, 16, 4], strides = [1, 1, 1]} : vector<10x18x4xf32> to vector<8x16x4xf32>
    %25 = vector.shape_cast %24 : vector<8x16x4xf32> to vector<128x4xf32>
    %c3 = arith.constant 3 : index
    %c0_17 = arith.constant 0 : index
    %c0_18 = arith.constant 0 : index
    %26 = vector.load %arg4[%c3, %c0_17, %c0_18] : memref<9x4x8xf32, #tpu.memory_space<vmem>>, vector<1x4x8xf32>
    %27 = vector.shape_cast %26 : vector<1x4x8xf32> to vector<4x8xf32>
    %cst_19 = arith.constant dense<0.000000e+00> : vector<128x8xf32>
    %28 = tpu.matmul %25, %27, %cst_19 {dimension_numbers = #tpu.dot_dimension_numbers<[1], [0], [0], [1], [0, 0, 1, 1], [], []>} : vector<128x4xf32>, vector<4x8xf32>, vector<128x8xf32> -> vector<128x8xf32>
    %29 = arith.addf %23, %28 : vector<128x8xf32>
    %30 = vector.extract_strided_slice %4 {offsets = [1, 1, 0], sizes = [8, 16, 4], strides = [1, 1, 1]} : vector<10x18x4xf32> to vector<8x16x4xf32>
    %31 = vector.shape_cast %30 : vector<8x16x4xf32> to vector<128x4xf32>
    %c4 = arith.constant 4 : index
    %c0_20 = arith.constant 0 : index
    %c0_21 = arith.constant 0 : index
    %32 = vector.load %arg4[%c4, %c0_20, %c0_21] : memref<9x4x8xf32, #tpu.memory_space<vmem>>, vector<1x4x8xf32>
    %33 = vector.shape_cast %32 : vector<1x4x8xf32> to vector<4x8xf32>
    %cst_22 = arith.constant dense<0.000000e+00> : vector<128x8xf32>
    %34 = tpu.matmul %31, %33, %cst_22 {dimension_numbers = #tpu.dot_dimension_numbers<[1], [0], [0], [1], [0, 0, 1, 1], [], []>} : vector<128x4xf32>, vector<4x8xf32>, vector<128x8xf32> -> vector<128x8xf32>
    %35 = arith.addf %29, %34 : vector<128x8xf32>
    %36 = vector.extract_strided_slice %4 {offsets = [1, 2, 0], sizes = [8, 16, 4], strides = [1, 1, 1]} : vector<10x18x4xf32> to vector<8x16x4xf32>
    %37 = vector.shape_cast %36 : vector<8x16x4xf32> to vector<128x4xf32>
    %c5 = arith.constant 5 : index
    %c0_23 = arith.constant 0 : index
    %c0_24 = arith.constant 0 : index
    %38 = vector.load %arg4[%c5, %c0_23, %c0_24] : memref<9x4x8xf32, #tpu.memory_space<vmem>>, vector<1x4x8xf32>
    %39 = vector.shape_cast %38 : vector<1x4x8xf32> to vector<4x8xf32>
    %cst_25 = arith.constant dense<0.000000e+00> : vector<128x8xf32>
    %40 = tpu.matmul %37, %39, %cst_25 {dimension_numbers = #tpu.dot_dimension_numbers<[1], [0], [0], [1], [0, 0, 1, 1], [], []>} : vector<128x4xf32>, vector<4x8xf32>, vector<128x8xf32> -> vector<128x8xf32>
    %41 = arith.addf %35, %40 : vector<128x8xf32>
    %42 = vector.extract_strided_slice %4 {offsets = [2, 0, 0], sizes = [8, 16, 4], strides = [1, 1, 1]} : vector<10x18x4xf32> to vector<8x16x4xf32>
    %43 = vector.shape_cast %42 : vector<8x16x4xf32> to vector<128x4xf32>
    %c6 = arith.constant 6 : index
    %c0_26 = arith.constant 0 : index
    %c0_27 = arith.constant 0 : index
    %44 = vector.load %arg4[%c6, %c0_26, %c0_27] : memref<9x4x8xf32, #tpu.memory_space<vmem>>, vector<1x4x8xf32>
    %45 = vector.shape_cast %44 : vector<1x4x8xf32> to vector<4x8xf32>
    %cst_28 = arith.constant dense<0.000000e+00> : vector<128x8xf32>
    %46 = tpu.matmul %43, %45, %cst_28 {dimension_numbers = #tpu.dot_dimension_numbers<[1], [0], [0], [1], [0, 0, 1, 1], [], []>} : vector<128x4xf32>, vector<4x8xf32>, vector<128x8xf32> -> vector<128x8xf32>
    %47 = arith.addf %41, %46 : vector<128x8xf32>
    %48 = vector.extract_strided_slice %4 {offsets = [2, 1, 0], sizes = [8, 16, 4], strides = [1, 1, 1]} : vector<10x18x4xf32> to vector<8x16x4xf32>
    %49 = vector.shape_cast %48 : vector<8x16x4xf32> to vector<128x4xf32>
    %c7 = arith.constant 7 : index
    %c0_29 = arith.constant 0 : index
    %c0_30 = arith.constant 0 : index
    %50 = vector.load %arg4[%c7, %c0_29, %c0_30] : memref<9x4x8xf32, #tpu.memory_space<vmem>>, vector<1x4x8xf32>
    %51 = vector.shape_cast %50 : vector<1x4x8xf32> to vector<4x8xf32>
    %cst_31 = arith.constant dense<0.000000e+00> : vector<128x8xf32>
    %52 = tpu.matmul %49, %51, %cst_31 {dimension_numbers = #tpu.dot_dimension_numbers<[1], [0], [0], [1], [0, 0, 1, 1], [], []>} : vector<128x4xf32>, vector<4x8xf32>, vector<128x8xf32> -> vector<128x8xf32>
    %53 = arith.addf %47, %52 : vector<128x8xf32>
    %54 = vector.extract_strided_slice %4 {offsets = [2, 2, 0], sizes = [8, 16, 4], strides = [1, 1, 1]} : vector<10x18x4xf32> to vector<8x16x4xf32>
    %55 = vector.shape_cast %54 : vector<8x16x4xf32> to vector<128x4xf32>
    %c8 = arith.constant 8 : index
    %c0_32 = arith.constant 0 : index
    %c0_33 = arith.constant 0 : index
    %56 = vector.load %arg4[%c8, %c0_32, %c0_33] : memref<9x4x8xf32, #tpu.memory_space<vmem>>, vector<1x4x8xf32>
    %57 = vector.shape_cast %56 : vector<1x4x8xf32> to vector<4x8xf32>
    %cst_34 = arith.constant dense<0.000000e+00> : vector<128x8xf32>
    %58 = tpu.matmul %55, %57, %cst_34 {dimension_numbers = #tpu.dot_dimension_numbers<[1], [0], [0], [1], [0, 0, 1, 1], [], []>} : vector<128x4xf32>, vector<4x8xf32>, vector<128x8xf32> -> vector<128x8xf32>
    %59 = arith.addf %53, %58 : vector<128x8xf32>
    %c0_35 = arith.constant 0 : index
    %c0_36 = arith.constant 0 : index
    %c0_37 = arith.constant 0 : index
    %c0_38 = arith.constant 0 : index
    %60 = vector.load %arg5[%c0_35, %c0_36, %c0_37, %c0_38] : memref<1x1x128x8xf32, #tpu.memory_space<vmem>>, vector<1x1x128x8xf32>
    %61 = vector.shape_cast %60 : vector<1x1x128x8xf32> to vector<128x8xf32>
    %62 = vector.shape_cast %59 : vector<128x8xf32> to vector<1x1x128x8xf32>
    tpu.vector_store %arg5[%c0_35, %c0_36, %c0_37, %c0_38], %62 {strides = array<i32>} : memref<1x1x128x8xf32, #tpu.memory_space<vmem>>, vector<1x1x128x8xf32>,
    %cst_39 = arith.constant dense<0.000000e+00> : vector<8xf32>
    %63 = vector.multi_reduction <add>, %59, %cst_39 [0] : vector<128x8xf32> to vector<8xf32>
    %64 = vector.shape_cast %63 : vector<8xf32> to vector<1x8xf32>
    %65 = arith.mulf %59, %59 : vector<128x8xf32>
    %cst_40 = arith.constant dense<0.000000e+00> : vector<8xf32>
    %66 = vector.multi_reduction <add>, %65, %cst_40 [0] : vector<128x8xf32> to vector<8xf32>
    %67 = vector.shape_cast %66 : vector<8xf32> to vector<1x8xf32>
    %cst_41 = arith.constant 0.000000e+00 : f32
    %68 = vector.broadcast %cst_41 : f32 to vector<6x8xf32>
    %69 = tpu.concatenate %64, %67, %68 in 0 : vector<1x8xf32>, vector<1x8xf32>, vector<6x8xf32> -> vector<8x8xf32>
    %c0_42 = arith.constant 0 : index
    %c0_43 = arith.constant 0 : index
    %c0_44 = arith.constant 0 : index
    %c0_45 = arith.constant 0 : index
    %70 = vector.load %arg6[%c0_42, %c0_43, %c0_44, %c0_45] : memref<1x1x8x8xf32, #tpu.memory_space<vmem>>, vector<1x1x8x8xf32>
    %71 = vector.shape_cast %70 : vector<1x1x8x8xf32> to vector<8x8xf32>
    %72 = vector.shape_cast %69 : vector<8x8xf32> to vector<1x1x8x8xf32>
    tpu.vector_store %arg6[%c0_42, %c0_43, %c0_44, %c0_45], %72 {strides = array<i32>} : memref<1x1x8x8xf32, #tpu.memory_space<vmem>>, vector<1x1x8x8xf32>,
    return
  }
  func.func @transform_0(%arg0: i32, %arg1: i32) -> (i32, i32, i32, i32) {
    %c0_i32 = arith.constant 0 : i32
    %c0_i32_0 = arith.constant 0 : i32
    %c0_i32_1 = arith.constant 0 : i32
    return %arg0, %arg1, %c0_i32, %c0_i32_0 : i32, i32, i32, i32
  }
  func.func @transform_1(%arg0: i32, %arg1: i32) -> (i32, i32, i32, i32) {
    %c1_i32 = arith.constant 1 : i32
    %0 = arith.addi %arg1, %c1_i32 : i32
    %c4_i32 = arith.constant 4 : i32
    %1 = arith.muli %0, %c4_i32 : i32
    %c0_i32 = arith.constant 0 : i32
    %c0_i32_0 = arith.constant 0 : i32
    %c0_i32_1 = arith.constant 0 : i32
    return %arg0, %1, %c0_i32, %c0_i32_0 : i32, i32, i32, i32
  }
  func.func @transform_2(%arg0: i32, %arg1: i32) -> (i32, i32, i32) {
    %c0_i32 = arith.constant 0 : i32
    %c0_i32_0 = arith.constant 0 : i32
    %c0_i32_1 = arith.constant 0 : i32
    %c0_i32_2 = arith.constant 0 : i32
    return %c0_i32, %c0_i32_0, %c0_i32_1 : i32, i32, i32
  }
  func.func @transform_3(%arg0: i32, %arg1: i32) -> (i32, i32, i32, i32) {
    %c0_i32 = arith.constant 0 : i32
    %c0_i32_0 = arith.constant 0 : i32
    %c0_i32_1 = arith.constant 0 : i32
    return %arg0, %arg1, %c0_i32, %c0_i32_0 : i32, i32, i32, i32
  }
  func.func @transform_4(%arg0: i32, %arg1: i32) -> (i32, i32, i32, i32) {
    %c0_i32 = arith.constant 0 : i32
    %c0_i32_0 = arith.constant 0 : i32
    %c0_i32_1 = arith.constant 0 : i32
    return %arg0, %arg1, %c0_i32, %c0_i32_0 : i32, i32, i32, i32
  }
}

</mosaic_0001>

<bundles_post_ra>
// kernel: tpu_custom_call.1
= control target key start
LH: loop header
LB: loop body
LE: loop exit
PB: predicated region body
PF: predicated region fallthrough
CT: control target
= control target key end

     0   :  { %10 = vsyncpa [#allocation3], 0  ;;  %s4151_s0 = inlined_call_operand.vmem [shape: f32[2,24,18,4], index: 0, kind: input, shape index: {}]   ;;  %s4152_s1 = inlined_call_operand.vmem [shape: f32[2,24,18,4], index: 1, kind: input, shape index: {}]   ;;  %s4153_s2 = inlined_call_operand.vmem [shape: f32[9,4,8], index: 2, kind: input, shape index: {}]   ;;  %s4154_s3 = inlined_call_operand.vmem [shape: f32[2,2,128,8], index: 3, kind: output, shape index: {0}]   ;;  %s4155_s4 = inlined_call_operand.hbm [shape: f32[2,2,8,8], index: 4, kind: output, shape index: {1}]  }
   0x1   :  { %12 = vsyncpa [#allocation3 + $0x1], 0  ;;  %s3107_s15 = smov 0   ;;  %s3109_s16 = smov 0  }
   0x2   :  { %s3111_s17 = smov 0   ;;  %s3113_s18 = smov 0  }
   0x3   :  { %s3115_s19 = smov 0   ;;  %s3117_s20 = smov 0  }
   0x4   :  { %s3119_s21 = smov 0   ;;  %s3121_s22 = smov 0  }
   0x5 LB: > { %s2333_s23 = sadd.s32 4294967295, %s3079_s22   ;;  %s2334_s24 = sadd.s32 4294967294, %s3079_s22   ;;  %s3079_s22 = sphi %s3121_s22, %s18_s22   ;;  %s3075_s21 = sphi %s3119_s21, %s4197_s21   ;;  %s3071_s20 = sphi %s3117_s20, %s4196_s20   ;;  %s3067_s19 = sphi %s3115_s19, %s4195_s19   ;;  %s3063_s18 = sphi %s3113_s18, %s4194_s18   ;;  %s3059_s17 = sphi %s3111_s17, %s4193_s17   ;;  %s3055_s16 = sphi %s3109_s16, %s4192_s16   ;;  %s3051_s15 = sphi %s3107_s15, %s4191_s15  }
   0x6   : > { %s27_s25 = sadd.s32 1, %s3071_s20  ;;  %s30_s26 = sadd.s32 1, %s3075_s21 }
   0x7   : > { %p28_p0 = scmp.ge.s32.totalorder %s27_s25, 2  ;;  %p158_p1 = scmp.ne.s32.totalorder %s3059_s17, %s3055_s16 }
   0x8   : > { %p159_p2 = scmp.eq.s32.totalorder %s2333_s23, 3  ;;  %p164_p5 = scmp.ne.s32.totalorder %s3055_s16, %s3051_s15 }
   0x9   : > { %s4199_s25 = smov (%p28_p0, %s27_s25), 0  ;;  %s4201_s26 = smov (!%p28_p0, %s30_s26), %s3075_s21 }
   0xa   : > { %s144_s27 = ssub.s32 %s3071_s20, %s4199_s25  ;;  %p3158_p3 = por %p159_p2, %p158_p1 }
   0xb   : > { %p32_p4 = scmp.ge.s32.totalorder %s4201_s26, 2  ;;  %p165_p6 = scmp.eq.s32.totalorder %s2334_s24, 3 }
   0xc   : > { %p2339_p7 = scmp.ge.s32.totalorder %s3079_s22, 1  ;;  %p218_p9 = scmp.lt.s32.totalorder %s3079_s22, 5 }
   0xd   : > { %s4203_s26 = smov (%p32_p4, %s4201_s26), 0  ;;  %p3167_p8 = por %p165_p6, %p164_p5 }
   0xe   : > { %s143_s30 = ssub.s32 %s3075_s21, %s4203_s26  ;;  %s148_s5 = sadd.s32 1, %s3059_s17 }
   0xf   : > { %s145_s6 = sor.u32 %s144_s27, %s143_s30  ;;  %p219_p10 = pnand %p2339_p7, %p218_p9 }
  0x10   : > { %p146_p11 = scmp.eq.s32.totalorder %s145_s6, 0 }
  0x11   : > { %222 = sbr.rel (%p219_p10) target bundleno = 411 (0x19b), region = 32 }
  0x12   : > { %s3176_s7 = scalar_select %p146_p11, %s3059_s17, %s148_s5  }
  0x16   : > { %v2349_v0 = vld [vmem:[%s4153_s2 + $0x4] sm:$0xf]  ;;  %vm436_vm0 = vcmask 1043456   ;;  %s3182_s10 = sshll.u32 %s3063_s18, 3  ;;  %p271_p12 = scmp.lt.s32.totalorder %s3067_s19, 1  ;;  %vm360_vm1 = vcmask 1046528  }
  0x17   : > { %2911 = vmatprep.subr.msk.mxu1 %vm436_vm0, %v2349_v0  ;;  %2677 = vmatprep.subr.msk.mxu0 %vm436_vm0, %v2349_v0  ;;  %p273_p13 = scmp.lt.s32.totalorder %s3182_s10, 23  ;;  %v335_v1 = vld [vmem:[%s4153_s2] sm:$0xf]  ;;  %v2384_v2 = vld [vmem:[%s4153_s2 + $0x8] sm:$0xf]  ;;  %s2523_s5 = sadd.s32 8, %s3182_s10 }
  0x18   : > { %2912 = vmatpush3.msk.msra.mxu1 %vm436_vm0, %v2349_v0  ;;  %2678 = vmatpush3.msk.msra.mxu0 %vm436_vm0, %v2349_v0  ;;  %s3197_s23 = scalar_select %p271_p12, %s3067_s19, 1  ;;  %vm403_vm2 = vcmask 31744   ;;  %v3256_v21 = vld [vmem:[%s4153_s2 + $0xc] sm:$0xf]  ;;  %v3278_v28 = vld [vmem:[%s4153_s2 + $0x10] sm:$0xf] }
  0x19   : > { %s274_s24 = scalar_select %p273_p13, %s3182_s10, 23  ;;  %2703 = vmatprep.subr.msk.mxu1 %vm436_vm0, %v335_v1  ;;  %2729 = vmatprep.subr.msk.mxu0 %vm436_vm0, %v2384_v2  ;;  %vm765_vm3 = vcmask 1045504   ;;  %vm2050_vm4 = vcmask 64512   ;;  %vm2157_vm5 = vcmask 1040384   ;;  %vm2159_vm6 = vcmask 1041408  }
  0x1a   : > { %s2914_s27 = smul.u32 72, %s3197_s23  ;;  %p3211_p0 = scmp.lt.s32.totalorder %s2523_s5, 23 }
  0x1b   : > { %s2913_s30 = smul.u32 3, %s274_s24  ;;  %p298_p1 = scmp.lt.s32.totalorder %s3063_s18, 1 }
  0x1c   : > { %s4205_s5 = smov (!%p3211_p0, %s2523_s5), 23  ;;  %s2347_s9 = sshll.u32 %s3197_s23, 5 }
  0x1d   : > { %s277_s6 = sadd.s32 %s2914_s27, %s2913_s30  ;;  %s267_s14 = sand.u32 1, %s3055_s16  }
  0x1e   : > { %s2342_s8 = sshll.u32 %s277_s6, 3  ;;  %s2915_s6 = smul.u32 3, %s4205_s5 }
  0x1f   : > { %s3209_s12 = scalar_lea.vmem %s4151_s0, %s2342_s8  ;;  %s2340_s24 = sshll.u32 %s267_s14, 3 }
  0x20   : > { %v3216_v3 = vld [vmem:[%s3209_s12] sm:$0xff]  ;;  %v3219_v4 = vld [vmem:[%s3209_s12 + $0x8] sm:$0xff]  ;;  %v3231_v10 = vld [vmem:[%s3209_s12 + $0x10] sm:$0x3]  ;;  %s290_s5 = sadd.s32 %s2915_s6, %s2914_s27  ;;  %s2511_s30 = sshll.u32 %s3067_s19, 1 }
  0x21   : > { %v3222_v5 = vld [vmem:[%s3209_s12 + $0x60] sm:$0xff]  ;;  %v361_v6 = vrot.slane %v3216_v3, 1  ;;  %v362_v7 = vrot.slane %v3219_v4, 1  ;;  %v3227_v8 = vld [vmem:[%s3209_s12 + $0x68] sm:$0xff]  ;;  %v364_v12 = vrot.slane %v3231_v10, 1  ;;  %v3239_v14 = vld [vmem:[%s3209_s12 + $0x18] sm:$0xff]  ;;  %s2186_s6 = sadd.s32 %s3063_s18, %s2511_s30 }
  0x22   : > { %v381_v9 = vrot.slane %v3222_v5, 1  ;;  %v382_v11 = vrot.slane %v3227_v8, 1  ;;  %v3236_v13 = vld [vmem:[%s3209_s12 + $0x70] sm:$0x3]  ;;  %v3244_v17 = vld [vmem:[%s3209_s12 + $0x20] sm:$0xff]  ;;  %v366_v18 = vrot.slane %v3239_v14, 1 }
  0x23   : > { %v363_v15 = vsel %vm360_vm1, %v361_v6, %v362_v7  ;;  %v384_v16 = vrot.slane %v3236_v13, 1  ;;  %v3248_v19 = vld [vmem:[%s3209_s12 + $0x78] sm:$0xff]  ;;  %v3251_v20 = vld [vmem:[%s3209_s12 + $0x80] sm:$0xff]  ;;  %v365_v23 = vsel %vm360_vm1, %v362_v7, %v364_v12  ;;  %v367_v24 = vrot.slane %v3244_v17, 1  ;;  %v3270_v26 = vld [vmem:[%s3209_s12 + $0x28] sm:$0x3] }
  0x24   : > { %2679 = vmatprep.mubr.msk.f32.mxu0 %vm403_vm2, %v363_v15  ;;  %v3264_v22 = vsel %vm360_vm1, %v381_v9, %v382_v11  ;;  %v386_v25 = vrot.slane %v3248_v19, 1  ;;  %v3273_v27 = vld [vmem:[%s3209_s12 + $0x88] sm:$0x3]  ;;  %v387_v30 = vrot.slane %v3251_v20, 1  ;;  %v369_v31 = vrot.slane %v3270_v26, 1  ;;  %v3290_v33 = vld [vmem:[%s3209_s12 + $0x30] sm:$0xff] }
  0x25   : > { %2691 = vmatprep.mubr.msk.f32.mxu1 %vm403_vm2, %v3264_v22  ;;  %2680 = vmatmul.mubr.msk.f32.vlgmr.msra.gmra.mxu0 %vm403_vm2, %v365_v23  ;;  %v3284_v29 = vsel %vm360_vm1, %v382_v11, %v384_v16  ;;  %v389_v32 = vrot.slane %v3273_v27, 1  ;;  %v3293_v34 = vld [vmem:[%s3209_s12 + $0x38] sm:$0xff]  ;;  %v3296_v35 = vld [vmem:[%s3209_s12 + $0x90] sm:$0xff]  ;;  %v3302_v36 = vsel %vm360_vm1, %v366_v18, %v367_v24  ;;  %v371_v37 = vrot.slane %v3290_v33, 1  ;;  %v3311_v41 = vld [vmem:[%s3209_s12 + $0x40] sm:$0x3] }
  0x26   : > { %2692 = vmatmul.mubr.msk.f32.vlgmr.msra.gmra.mxu1 %vm403_vm2, %v3284_v29  ;;  %2730 = vmatpush3.msk.msra.mxu0 %vm436_vm0, %v2384_v2  ;;  %v372_v38 = vrot.slane %v3293_v34, 1  ;;  %v3307_v39 = vld [vmem:[%s3209_s12 + $0x98] sm:$0xff]  ;;  %v391_v40 = vrot.slane %v3296_v35, 1  ;;  %v3317_v42 = vsel %vm360_vm1, %v386_v25, %v387_v30  ;;  %v3320_v43 = vsel %vm360_vm1, %v367_v24, %v369_v31  ;;  %v3327_v46 = vld [vmem:[%s3209_s12 + $0xa0] sm:$0x3]  ;;  %v3330_v47 = vld [vmem:[%s3209_s12 + $0x48] sm:$0xff] }
  0x27   : > { %2704 = vmatpush3.msk.msra.mxu1 %vm436_vm0, %v335_v1  ;;  %2682 = vmatprep.mubr.msk.f32.mxu0 %vm403_vm2, %v3302_v36  ;;  %v3323_v44 = vsel %vm360_vm1, %v387_v30, %v389_v32  ;;  %v392_v45 = vrot.slane %v3307_v39, 1  ;;  %v3333_v48 = vld [vmem:[%s3209_s12 + $0x50] sm:$0xff]  ;;  %v374_v50 = vrot.slane %v3311_v41, 1  ;;  %v394_v51 = vrot.slane %v3327_v46, 1  ;;  %v3345_v53 = vld [vmem:[%s3209_s12 + $0xa8] sm:$0xff]  ;;  %s2345_s27 = sshll.u32 %s290_s5, 3 }
  0x28   : > { %2694 = vmatprep.mubr.msk.f32.mxu1 %vm403_vm2, %v3317_v42  ;;  %v3339_v49 = vsel %vm360_vm1, %v371_v37, %v372_v38  ;;  %v376_v52 = vrot.slane %v3330_v47, 1  ;;  %v3348_v54 = vld [vmem:[%s3209_s12 + $0xb0] sm:$0xff]  ;;  %2755 = vmatprep.subr.msk.mxu1 %vm436_vm0, %v3256_v21  ;;  %v377_v56 = vrot.slane %v3333_v48, 1  ;;  %v396_v57 = vrot.slane %v3345_v53, 1  ;;  %v3361_v59 = vld [vmem:[%s3209_s12 + $0x58] sm:$0x3]  ;;  %s3405_s11 = scalar_lea.vmem %s4152_s1, %s2345_s27 }
  0x29   : > { %2683 = vmatmul.mubr.msk.f32.gmra.mxu0 %vm403_vm2, %v3320_v43  ;;  %v3355_v55 = vsel %vm360_vm1, %v391_v40, %v392_v45  ;;  %v397_v58 = vrot.slane %v3348_v54, 1  ;;  %2781 = vmatprep.subr.msk.mxu0 %vm436_vm0, %v3278_v28  ;;  %v3372_v60 = vsel %vm360_vm1, %v372_v38, %v374_v50  ;;  %v379_v61 = vrot.slane %v3361_v59, 1  ;;  %v3376_v62 = vld [vmem:[%s3209_s12 + $0xb8] sm:$0x3]  ;;  %v3418_v18 = vld [vmem:[%s3405_s11] sm:$0xff]  ;;  %v3428_v31 = vld [vmem:[%s3405_s11 + $0x8] sm:$0xff] }
  0x2a   : > { %2695 = vmatmul.mubr.msk.f32.gmra.mxu1 %vm403_vm2, %v3323_v44  ;;  %2685 = vmatprep.mubr.msk.f32.mxu0 %vm403_vm2, %v3339_v49  ;;  %v766_v63 = vrot.slane %v3216_v3, 2  ;;  %v3382_v0 = vsel %vm360_vm1, %v392_v45, %v394_v51  ;;  %v3385_v1 = vsel %vm360_vm1, %v376_v52, %v377_v56  ;;  %v399_v2 = vrot.slane %v3376_v62, 1  ;;  %v331_v32 = vld [vmem:[%s3405_s11 + $0x10] sm:$0x3]  ;;  %v3445_v50 = vld [vmem:[%s3405_s11 + $0x18] sm:$0xff]  ;;  %s299_s27 = scalar_select %p298_p1, %s3063_s18, 1 }
  0x2b   : > { %2697 = vmatprep.mubr.msk.f32.mxu1 %vm403_vm2, %v3355_v55  ;;  %v767_v6 = vrot.slane %v3219_v4, 2  ;;  %v3390_v7 = vsel %vm360_vm1, %v396_v57, %v397_v58  ;;  %v769_v9 = vrot.slane %v3231_v10, 2  ;;  %v3400_v11 = vsel %vm360_vm1, %v377_v56, %v379_v61  ;;  %v334_v56 = vld [vmem:[%s3405_s11 + $0x28] sm:$0x3]  ;;  %v3465_v61 = vld [vmem:[%s4153_s2 + $0x18] sm:$0xf] }
  0x2c   : > { %v3410_v10 = vsel %vm360_vm1, %v397_v58, %v399_v2  ;;  %v771_v15 = vrot.slane %v3239_v14, 2  ;;  %v772_v16 = vrot.slane %v3244_v17, 2  ;;  %v774_v24 = vrot.slane %v3270_v26, 2  ;;  %v3441_v26 = vld [vmem:[%s4153_s2 + $0x14] sm:$0xf]  ;;  %s2346_s8 = sshll.u32 %s299_s27, 4 }
  0x2d   : > { %2686 = vmatmul.mubr.msk.f32.gmra.mxu0 %vm403_vm2, %v3372_v60  ;;  %v768_v12 = vsel %vm765_vm3, %v766_v63, %v767_v6  ;;  %v770_v23 = vsel %vm765_vm3, %v767_v6, %v769_v9  ;;  %v776_v25 = vrot.slane %v3290_v33, 2  ;;  %v777_v30 = vrot.slane %v3293_v34, 2  ;;  %s2512_s5 = sshll.u32 %s2186_s6, 7  ;;  %s269_s27 = scalar_lea.vmem [#allocation2], %s2340_s24 }
  0x2e   : > { %2698 = vmatmul.mubr.msk.f32.gmra.mxu1 %vm403_vm2, %v3382_v0  ;;  %2688 = vmatprep.mubr.msk.f32.mxu0 %vm403_vm2, %v3385_v1  ;;  %v3434_v37 = vsel %vm765_vm3, %v771_v15, %v772_v16  ;;  %v779_v38 = vrot.slane %v3311_v41, 2  ;;  %v781_v40 = vrot.slane %v3330_v47, 2  ;;  %v1177_v45 = vrot.slane %v3418_v18, 1  ;;  %s2172_s18 = scalar_lea.sflag [#allocation3], %s267_s14  ;;  %s3081_s12 = smov [#allocation2]  }
  0x2f   : > { %2700 = vmatprep.mubr.msk.f32.mxu1 %vm403_vm2, %v3390_v7  ;;  %v1352_v51 = vrot.slane %v3418_v18, 2  ;;  %v1178_v52 = vrot.slane %v3428_v31, 1  ;;  %v1180_v41 = vrot.slane %v331_v32, 1  ;;  %v3457_v57 = vsel %vm765_vm3, %v772_v16, %v774_v24  ;;  %s2991_s13 = sshll.u32 %s3081_s12, 4  ;;  %s2992_s13 = int_to_ptr.vmem [resolvable:$false] %s2991_s13 }
  0x30   : > { %v3460_v58 = vsel %vm765_vm3, %v776_v25, %v777_v30  ;;  %v1353_v63 = vrot.slane %v3428_v31, 2  ;;  %v1700_v2 = vrot.slane %v3445_v50, 1  ;;  %v1875_v6 = vrot.slane %v3445_v50, 2 }
  0x31   : > { %2689 = vmatmul.mubr.msk.f32.gmra.mxu0 %vm403_vm2, %v3400_v11  ;;  %v1355_v9 = vrot.slane %v331_v32, 2  ;;  %v3495_v24 = vsel %vm765_vm3, %v777_v30, %v779_v38  ;;  %v1878_v32 = vrot.slane %v334_v56, 2 }
  0x32   : > { %2701 = vmatmul.mubr.msk.f32.gmra.mxu1 %vm403_vm2, %v3410_v10  ;;  %2731 = vmatprep.mubr.msk.f32.mxu0 %vm403_vm2, %v768_v12  ;;  %v3481_v12 = vld [vmem:[%s3405_s11 + $0x20] sm:$0xff]  ;;  %s3961_s11 = sadd.s32 %s2347_s9, %s2346_s8  ;;  %s2190_s8 = sshll.u32 %s269_s27, 4  ;;  %s2191_s8 = int_to_ptr.vmem [resolvable:$true] %s2190_s8 }
  0x33   : > { %2705 = vmatprep.mubr.msk.f32.mxu1 %vm403_vm2, %v3216_v3  ;;  %v782_v3 = vrot.slane %v3333_v48, 2  ;;  %v1701_v15 = vrot.slane %v3481_v12, 1  ;;  %v1876_v16 = vrot.slane %v3481_v12, 2  ;;  %v3500_v25 = vsel %vm765_vm3, %v1353_v63, %v1355_v9  ;;  %s2348_s23 = sshll.u32 %s3961_s11, 3  ;;  %s2987_s19 = scalar_lea.vmem %s2191_s8, 128 }
  0x34   : > { %v792_v9 = vrot.slane %v3251_v20, 2  ;;  %s3998_s10 = scalar_lea.vmem %s4154_s3, %s2348_s23  ;;  %s4104_s23 = scalar_lea.hbm %s4155_s4, %s2512_s5 }
  0x35   : > { %2732 = vmatmul.mubr.msk.f32.vlgmr.msra.gmra.mxu0 %vm403_vm2, %v770_v23  ;;  %v1703_v23 = vrot.slane %v334_v56, 1  ;;  %v3511_v30 = vsel %vm765_vm3, %v1875_v6, %v1876_v16  ;;  %v787_v56 = vrot.slane %v3227_v8, 2  ;;  %v791_v6 = vrot.slane %v3248_v19, 2  ;;  %p2988_p2 = scmp.ne.s32.totalorder %s2191_s8, %s2987_s19  ;;  %p2994_p6 = scmp.lt.s32.totalorder %s2191_s8, %s2992_s13 }
  0x36   : > { %2706 = vmatmul.mubr.msk.f32.vlgmr.msra.gmra.mxu1 %vm403_vm2, %v3219_v4  ;;  %2782 = vmatpush3.msk.msra.mxu0 %vm436_vm0, %v3278_v28  ;;  %v3474_v4 = vsel %vm360_vm1, %v1177_v45, %v1178_v52  ;;  %v3477_v28 = vsel %vm360_vm1, %v1178_v52, %v1180_v41  ;;  %v784_v45 = vrot.slane %v3361_v59, 2  ;;  %v3519_v52 = vsel %vm765_vm3, %v781_v40, %v782_v3 }
  0x37   : > { %2756 = vmatpush3.msk.msra.mxu1 %vm436_vm0, %v3256_v21  ;;  %2708 = vmatprep.mubr.msk.f32.mxu1 %vm403_vm2, %v3239_v14  ;;  %v3488_v21 = vsel %vm765_vm3, %v1352_v51, %v1353_v63  ;;  %v3508_v51 = vsel %vm360_vm1, %v1700_v2, %v1701_v15  ;;  %v3514_v38 = vsel %vm360_vm1, %v1701_v15, %v1703_v23  ;;  %v786_v41 = vrot.slane %v3222_v5, 2  ;;  %p2989_p4 = pnand %p2988_p2, %p3158_p3 }
  0x38   : > { %2734 = vmatprep.mubr.msk.f32.mxu0 %vm403_vm2, %v3434_v37  ;;  %2807 = vmatprep.subr.msk.mxu1 %vm436_vm0, %v3441_v26  ;;  %v3524_v59 = vsel %vm765_vm3, %v1876_v16, %v1878_v32  ;;  %v3533_v63 = vsel %vm765_vm3, %v782_v3, %v784_v45  ;;  %v789_v40 = vrot.slane %v3236_v13, 2  ;;  %v794_v3 = vrot.slane %v3273_v27, 2 }
  0x39   : > { %2735 = vmatmul.mubr.msk.f32.gmra.mxu0 %vm403_vm2, %v3457_v57  ;;  %2833 = vmatprep.subr.msk.mxu0 %vm436_vm0, %v3465_v61  ;;  %v3539_v2 = vsel %vm765_vm3, %v786_v41, %v787_v56  ;;  %v3556_v15 = vsel %vm765_vm3, %v791_v6, %v792_v9  ;;  %v796_v16 = vrot.slane %v3296_v35, 2  ;;  %v797_v23 = vrot.slane %v3307_v39, 2  ;;  %p2990_p5 = pneg %p2989_p4 }
  0x3a   : > { %2709 = vmatmul.mubr.msk.f32.gmra.mxu1 %vm403_vm2, %v3244_v17  ;;  %2737 = vmatprep.mubr.msk.f32.mxu0 %vm403_vm2, %v3460_v58  ;;  %v3550_v13 = vsel %vm765_vm3, %v787_v56, %v789_v40  ;;  %v3567_v27 = vsel %vm765_vm3, %v792_v9, %v794_v3  ;;  %v799_v32 = vrot.slane %v3327_v46, 2  ;;  %v801_v41 = vrot.slane %v3345_v53, 2 }
  0x3b   : > { %2711 = vmatprep.mubr.msk.f32.mxu1 %vm403_vm2, %v3290_v33  ;;  %v3573_v45 = vsel %vm765_vm3, %v796_v16, %v797_v23  ;;  %v802_v56 = vrot.slane %v3348_v54, 2  ;;  %v804_v40 = vrot.slane %v3376_v62, 2  ;;  %v2474_v62 = vld [vmem:[%s4153_s2 + $0x1c] sm:$0xf] }
  0x3c   : > { %v3584_v46 = vsel %vm765_vm3, %v797_v23, %v799_v32 }
  0x3d   : > { %2738 = vmatmul.mubr.msk.f32.gmra.mxu0 %vm403_vm2, %v3495_v24  ;;  %v3590_v6 = vsel %vm765_vm3, %v801_v41, %v802_v56  ;;  %v3599_v9 = vsel %vm765_vm3, %v802_v56, %v804_v40 }
  0x3e   : > { %2712 = vmatmul.mubr.msk.f32.gmra.mxu1 %vm403_vm2, %v3293_v34  ;;  %2740 = vmatprep.mubr.msk.f32.mxu0 %vm403_vm2, %v3519_v52 }
  0x3f   : > { %2714 = vmatprep.mubr.msk.f32.mxu1 %vm403_vm2, %v3330_v47 }
  0x41   : > { %2741 = vmatmul.mubr.msk.f32.gmra.mxu0 %vm403_vm2, %v3533_v63 }
  0x42   : > { %2715 = vmatmul.mubr.msk.f32.gmra.mxu1 %vm403_vm2, %v3333_v48  ;;  %2743 = vmatprep.mubr.msk.f32.mxu0 %vm403_vm2, %v3539_v2 }
  0x43   : > { %2717 = vmatprep.mubr.msk.f32.mxu1 %vm403_vm2, %v3222_v5 }
  0x45   : > { %2744 = vmatmul.mubr.msk.f32.gmra.mxu0 %vm403_vm2, %v3550_v13 }
  0x46   : > { %2718 = vmatmul.mubr.msk.f32.gmra.mxu1 %vm403_vm2, %v3227_v8  ;;  %2746 = vmatprep.mubr.msk.f32.mxu0 %vm403_vm2, %v3556_v15 }
  0x47   : > { %2720 = vmatprep.mubr.msk.f32.mxu1 %vm403_vm2, %v3248_v19 }
  0x49   : > { %2747 = vmatmul.mubr.msk.f32.gmra.mxu0 %vm403_vm2, %v3567_v27 }
  0x4a   : > { %2721 = vmatmul.mubr.msk.f32.gmra.mxu1 %vm403_vm2, %v3251_v20  ;;  %2749 = vmatprep.mubr.msk.f32.mxu0 %vm403_vm2, %v3573_v45 }
  0x4b   : > { %2723 = vmatprep.mubr.msk.f32.mxu1 %vm403_vm2, %v3296_v35 }
  0x4d   : > { %2750 = vmatmul.mubr.msk.f32.gmra.mxu0 %vm403_vm2, %v3584_v46 }
  0x4e   : > { %2724 = vmatmul.mubr.msk.f32.gmra.mxu1 %vm403_vm2, %v3307_v39  ;;  %2752 = vmatprep.mubr.msk.f32.mxu0 %vm403_vm2, %v3590_v6 }
  0x4f   : > { %2726 = vmatprep.mubr.msk.f32.mxu1 %vm403_vm2, %v3345_v53 }
  0x51   : > { %2753 = vmatmul.mubr.msk.f32.gmra.mxu0 %vm403_vm2, %v3599_v9 }
  0x52   : > { %2727 = vmatmul.mubr.msk.f32.gmra.mxu1 %vm403_vm2, %v3348_v54  ;;  %2783 = vmatprep.mubr.msk.f32.mxu0 %vm403_vm2, %v3302_v36  ;;  %v2492_v36 = vld [vmem:[%s4153_s2 + $0x20] sm:$0xf] }
  0x53   : > { %2757 = vmatprep.mubr.msk.f32.mxu1 %vm403_vm2, %v3239_v14 }
  0x55   : > { %2784 = vmatmul.mubr.msk.f32.vlgmr.msra.gmra.mxu0 %vm403_vm2, %v3320_v43 }
  0x56   : > { %2758 = vmatmul.mubr.msk.f32.vlgmr.msra.gmra.mxu1 %vm403_vm2, %v3244_v17  ;;  %2834 = vmatpush3.msk.msra.mxu0 %vm436_vm0, %v3465_v61 }
  0x57   : > { %2808 = vmatpush3.msk.msra.mxu1 %vm436_vm0, %v3441_v26  ;;  %2760 = vmatprep.mubr.msk.f32.mxu1 %vm403_vm2, %v3290_v33 }
  0x58   : > { %2786 = vmatprep.mubr.msk.f32.mxu0 %vm403_vm2, %v3339_v49  ;;  %2859 = vmatprep.subr.msk.mxu1 %vm436_vm0, %v2474_v62 }
  0x59   : > { %2787 = vmatmul.mubr.msk.f32.gmra.mxu0 %vm403_vm2, %v3372_v60  ;;  %2885 = vmatprep.subr.msk.mxu0 %vm436_vm0, %v2492_v36 }
  0x5a   : > { %2761 = vmatmul.mubr.msk.f32.gmra.mxu1 %vm403_vm2, %v3293_v34  ;;  %2789 = vmatprep.mubr.msk.f32.mxu0 %vm403_vm2, %v3385_v1 }
  0x5b   : > { %2763 = vmatprep.mubr.msk.f32.mxu1 %vm403_vm2, %v3330_v47 }
  0x5d   : > { %2790 = vmatmul.mubr.msk.f32.gmra.mxu0 %vm403_vm2, %v3400_v11 }
  0x5e   : > { %2764 = vmatmul.mubr.msk.f32.gmra.mxu1 %vm403_vm2, %v3333_v48  ;;  %2792 = vmatprep.mubr.msk.f32.mxu0 %vm403_vm2, %v3264_v22 }
  0x5f   : > { %2766 = vmatprep.mubr.msk.f32.mxu1 %vm403_vm2, %v3222_v5 }
  0x61   : > { %2793 = vmatmul.mubr.msk.f32.gmra.mxu0 %vm403_vm2, %v3284_v29 }
  0x62   : > { %2767 = vmatmul.mubr.msk.f32.gmra.mxu1 %vm403_vm2, %v3227_v8  ;;  %2795 = vmatprep.mubr.msk.f32.mxu0 %vm403_vm2, %v3317_v42 }
  0x63   : > { %2769 = vmatprep.mubr.msk.f32.mxu1 %vm403_vm2, %v3248_v19 }
  0x65   : > { %2796 = vmatmul.mubr.msk.f32.gmra.mxu0 %vm403_vm2, %v3323_v44 }
  0x66   : > { %2770 = vmatmul.mubr.msk.f32.gmra.mxu1 %vm403_vm2, %v3251_v20  ;;  %2798 = vmatprep.mubr.msk.f32.mxu0 %vm403_vm2, %v3355_v55 }
  0x67   : > { %2772 = vmatprep.mubr.msk.f32.mxu1 %vm403_vm2, %v3296_v35 }
  0x69   : > { %2799 = vmatmul.mubr.msk.f32.gmra.mxu0 %vm403_vm2, %v3382_v0 }
  0x6a   : > { %2773 = vmatmul.mubr.msk.f32.gmra.mxu1 %vm403_vm2, %v3307_v39  ;;  %2801 = vmatprep.mubr.msk.f32.mxu0 %vm403_vm2, %v3390_v7 }
  0x6b   : > { %2775 = vmatprep.mubr.msk.f32.mxu1 %vm403_vm2, %v3345_v53 }
  0x6d   : > { %2802 = vmatmul.mubr.msk.f32.gmra.mxu0 %vm403_vm2, %v3410_v10 }
  0x6e   : > { %2776 = vmatmul.mubr.msk.f32.gmra.mxu1 %vm403_vm2, %v3348_v54  ;;  %2804 = vmatprep.mubr.msk.f32.mxu0 %vm403_vm2, %v3474_v4 }
  0x6f   : > { %2778 = vmatprep.mubr.msk.f32.mxu1 %vm403_vm2, %v3418_v18 }
  0x71   : > { %2805 = vmatmul.mubr.msk.f32.gmra.mxu0 %vm403_vm2, %v3477_v28 }
  0x72   : > { %2779 = vmatmul.mubr.msk.f32.gmra.mxu1 %vm403_vm2, %v3428_v31  ;;  %2835 = vmatprep.mubr.msk.f32.mxu0 %vm403_vm2, %v3290_v33 }
  0x73   : > { %2809 = vmatprep.mubr.msk.f32.mxu1 %vm403_vm2, %v3434_v37 }
  0x75   : > { %2836 = vmatmul.mubr.msk.f32.vlgmr.msra.gmra.mxu0 %vm403_vm2, %v3293_v34 }
  0x76   : > { %2810 = vmatmul.mubr.msk.f32.vlgmr.msra.gmra.mxu1 %vm403_vm2, %v3457_v57  ;;  %2886 = vmatpush3.msk.msra.mxu0 %vm436_vm0, %v2492_v36 }
  0x77   : > { %2860 = vmatpush3.msk.msra.mxu1 %vm436_vm0, %v2474_v62  ;;  %2812 = vmatprep.mubr.msk.f32.mxu1 %vm403_vm2, %v3460_v58 }
  0x78   : > { %2838 = vmatprep.mubr.msk.f32.mxu0 %vm403_vm2, %v3330_v47 }
  0x79   : > { %2839 = vmatmul.mubr.msk.f32.gmra.mxu0 %vm403_vm2, %v3333_v48 }
  0x7a   : > { %2813 = vmatmul.mubr.msk.f32.gmra.mxu1 %vm403_vm2, %v3495_v24  ;;  %2841 = vmatprep.mubr.msk.f32.mxu0 %vm403_vm2, %v3222_v5 }
  0x7b   : > { %2815 = vmatprep.mubr.msk.f32.mxu1 %vm403_vm2, %v3519_v52 }
  0x7d   : > { %2842 = vmatmul.mubr.msk.f32.gmra.mxu0 %vm403_vm2, %v3227_v8 }
  0x7e   : > { %2816 = vmatmul.mubr.msk.f32.gmra.mxu1 %vm403_vm2, %v3533_v63  ;;  %2844 = vmatprep.mubr.msk.f32.mxu0 %vm403_vm2, %v3248_v19 }
  0x7f   : > { %2818 = vmatprep.mubr.msk.f32.mxu1 %vm403_vm2, %v3539_v2 }
  0x81   : > { %2845 = vmatmul.mubr.msk.f32.gmra.mxu0 %vm403_vm2, %v3251_v20 }
  0x82   : > { %2819 = vmatmul.mubr.msk.f32.gmra.mxu1 %vm403_vm2, %v3550_v13  ;;  %2847 = vmatprep.mubr.msk.f32.mxu0 %vm403_vm2, %v3296_v35 }
  0x83   : > { %2821 = vmatprep.mubr.msk.f32.mxu1 %vm403_vm2, %v3556_v15 }
  0x85   : > { %2848 = vmatmul.mubr.msk.f32.gmra.mxu0 %vm403_vm2, %v3307_v39 }
  0x86   : > { %2822 = vmatmul.mubr.msk.f32.gmra.mxu1 %vm403_vm2, %v3567_v27  ;;  %2850 = vmatprep.mubr.msk.f32.mxu0 %vm403_vm2, %v3345_v53 }
  0x87   : > { %2824 = vmatprep.mubr.msk.f32.mxu1 %vm403_vm2, %v3573_v45 }
  0x89   : > { %2851 = vmatmul.mubr.msk.f32.gmra.mxu0 %vm403_vm2, %v3348_v54 }
  0x8a   : > { %2825 = vmatmul.mubr.msk.f32.gmra.mxu1 %vm403_vm2, %v3584_v46  ;;  %2853 = vmatprep.mubr.msk.f32.mxu0 %vm403_vm2, %v3418_v18 }
  0x8b   : > { %2827 = vmatprep.mubr.msk.f32.mxu1 %vm403_vm2, %v3590_v6 }
  0x8d   : > { %2854 = vmatmul.mubr.msk.f32.gmra.mxu0 %vm403_vm2, %v3428_v31 }
  0x8e   : > { %2828 = vmatmul.mubr.msk.f32.gmra.mxu1 %vm403_vm2, %v3599_v9  ;;  %2856 = vmatprep.mubr.msk.f32.mxu0 %vm403_vm2, %v3445_v50 }
  0x8f   : > { %2830 = vmatprep.mubr.msk.f32.mxu1 %vm403_vm2, %v3488_v21 }
  0x91   : > { %2857 = vmatmul.mubr.msk.f32.gmra.mxu0 %vm403_vm2, %v3481_v12 }
  0x92   : > { %2831 = vmatmul.mubr.msk.f32.gmra.mxu1 %vm403_vm2, %v3500_v25  ;;  %2887 = vmatprep.mubr.msk.f32.mxu0 %vm403_vm2, %v3460_v58 }
  0x93   : > { %2861 = vmatprep.mubr.msk.f32.mxu1 %vm403_vm2, %v3339_v49 }
  0x95   : > { %2888 = vmatmul.mubr.msk.f32.vlgmr.msra.gmra.mxu0 %vm403_vm2, %v3495_v24 }
  0x96   : > { %2862 = vmatmul.mubr.msk.f32.vlgmr.msra.gmra.mxu1 %vm403_vm2, %v3372_v60  ;;  %2890 = vmatprep.mubr.msk.f32.mxu0 %vm403_vm2, %v3519_v52 }
  0x97   : > { %2864 = vmatprep.mubr.msk.f32.mxu1 %vm403_vm2, %v3385_v1 }
  0x99   : > { %2891 = vmatmul.mubr.msk.f32.gmra.mxu0 %vm403_vm2, %v3533_v63 }
  0x9a   : > { %2865 = vmatmul.mubr.msk.f32.gmra.mxu1 %vm403_vm2, %v3400_v11  ;;  %2893 = vmatprep.mubr.msk.f32.mxu0 %vm403_vm2, %v3539_v2 }
  0x9b   : > { %2867 = vmatprep.mubr.msk.f32.mxu1 %vm403_vm2, %v3264_v22 }
  0x9d   : > { %2894 = vmatmul.mubr.msk.f32.gmra.mxu0 %vm403_vm2, %v3550_v13 }
  0x9e   : > { %2868 = vmatmul.mubr.msk.f32.gmra.mxu1 %vm403_vm2, %v3284_v29  ;;  %2896 = vmatprep.mubr.msk.f32.mxu0 %vm403_vm2, %v3556_v15 }
  0x9f   : > { %2870 = vmatprep.mubr.msk.f32.mxu1 %vm403_vm2, %v3317_v42 }
  0xa1   : > { %2897 = vmatmul.mubr.msk.f32.gmra.mxu0 %vm403_vm2, %v3567_v27 }
  0xa2   : > { %2871 = vmatmul.mubr.msk.f32.gmra.mxu1 %vm403_vm2, %v3323_v44  ;;  %2899 = vmatprep.mubr.msk.f32.mxu0 %vm403_vm2, %v3573_v45 }
  0xa3   : > { %2873 = vmatprep.mubr.msk.f32.mxu1 %vm403_vm2, %v3355_v55 }
  0xa5   : > { %2900 = vmatmul.mubr.msk.f32.gmra.mxu0 %vm403_vm2, %v3584_v46 }
  0xa6   : > { %2874 = vmatmul.mubr.msk.f32.gmra.mxu1 %vm403_vm2, %v3382_v0  ;;  %2902 = vmatprep.mubr.msk.f32.mxu0 %vm403_vm2, %v3590_v6 }
  0xa7   : > { %2876 = vmatprep.mubr.msk.f32.mxu1 %vm403_vm2, %v3390_v7 }
  0xa9   : > { %2903 = vmatmul.mubr.msk.f32.gmra.mxu0 %vm403_vm2, %v3599_v9 }
  0xaa   : > { %2877 = vmatmul.mubr.msk.f32.gmra.mxu1 %vm403_vm2, %v3410_v10  ;;  %2905 = vmatprep.mubr.msk.f32.mxu0 %vm403_vm2, %v3488_v21 }
  0xab   : > { %2879 = vmatprep.mubr.msk.f32.mxu1 %vm403_vm2, %v3474_v4 }
  0xad   : > { %2906 = vmatmul.mubr.msk.f32.gmra.mxu0 %vm403_vm2, %v3500_v25 }
  0xae   : > { %2880 = vmatmul.mubr.msk.f32.gmra.mxu1 %vm403_vm2, %v3477_v28  ;;  %2908 = vmatprep.mubr.msk.f32.mxu0 %vm403_vm2, %v3511_v30 }
  0xaf   : > { %2882 = vmatprep.mubr.msk.f32.mxu1 %vm403_vm2, %v3508_v51 }
  0xb1   : > { %2909 = vmatmul.mubr.msk.f32.gmra.mxu0 %vm403_vm2, %v3524_v59 }
  0xb2   : > { %2883 = vmatmul.mubr.msk.f32.gmra.mxu1 %vm403_vm2, %v3514_v38 }
  0xe5   : > { %v2681_v5 = vpop.f32.mrf.mxu0 }
  0xe6   : > { %v2693_v8 = vpop.f32.mrf.mxu1 }
  0xe7   : > { %v506_v14 = vpop.f32.mrf.mxu0 }
  0xe8   : > { %v546_v17 = vpop.f32.mrf.mxu1 }
  0xe9   : > { %v2684_v19 = vpop.f32.mrf.mxu0 }
  0xea   : > { %v2696_v20 = vpop.f32.mrf.mxu1 }
  0xeb   : > { %v516_v22 = vpop.f32.mrf.mxu0 }
  0xec   : > { %v556_v29 = vpop.f32.mrf.mxu1 }
  0xed   : > { %v2687_v33 = vpop.f32.mrf.mxu0 }
  0xee   : > { %v2699_v34 = vpop.f32.mrf.mxu1 }
  0xef   : > { %v526_v35 = vpop.f32.mrf.mxu0 }
  0xf0   : > { %v566_v39 = vpop.f32.mrf.mxu1 }
  0xf1   : > { %v2690_v42 = vpop.f32.mrf.mxu0 }
  0xf2   : > { %v2702_v43 = vpop.f32.mrf.mxu1 }
  0xf3   : > { %v536_v44 = vpop.f32.mrf.mxu0 }
  0xf4   : > { %v3813_v47 = vpop.f32.mrf.mxu1 }
  0xf5   : > { %v2733_v48 = vpop.f32.mrf.mxu0 }
  0xf6   : > { %v2707_v49 = vpop.f32.mrf.mxu1 }
  0xf7   : > { %v692_v53 = vadd.f32 %v2707_v49, %v2681_v5  ;;  %v909_v54 = vpop.f32.mrf.mxu0 }
  0xf8   : > { %v686_v55 = vpop.f32.mrf.mxu1 }
  0xf9   : > { %v3815_v60 = vadd.f32 %v2733_v48, %v692_v53  ;;  %v687_v0 = vadd.f32 %v686_v55, %v506_v14  ;;  %v2736_v1 = vpop.f32.mrf.mxu0 }
  0xfa   : > { %v2710_v7 = vpop.f32.mrf.mxu1 }
  0xfb   : > { %v3817_v11 = vadd.f32 %v909_v54, %v687_v0  ;;  %v702_v10 = vadd.f32 %v2710_v7, %v2684_v19  ;;  %v919_v18 = vpop.f32.mrf.mxu0 }
  0xfc   : > { %v696_v31 = vpop.f32.mrf.mxu1 }
  0xfd   : > { %v3819_v37 = vadd.f32 %v2736_v1, %v702_v10  ;;  %v697_v26 = vadd.f32 %v696_v31, %v516_v22  ;;  %v2739_v50 = vpop.f32.mrf.mxu0 }
  0xfe   : > { %v2713_v57 = vpop.f32.mrf.mxu1 }
  0xff   : > { %v3821_v58 = vadd.f32 %v919_v18, %v697_v26  ;;  %v712_v61 = vadd.f32 %v2713_v57, %v2687_v33  ;;  %v929_v4 = vpop.f32.mrf.mxu0 }
 0x100   : > { %v706_v28 = vpop.f32.mrf.mxu1 }
 0x101   : > { %v3823_v12 = vadd.f32 %v2739_v50, %v712_v61  ;;  %v707_v21 = vadd.f32 %v706_v28, %v526_v35  ;;  %v2742_v24 = vpop.f32.mrf.mxu0 }
 0x102   : > { %v2716_v25 = vpop.f32.mrf.mxu1 }
 0x103   : > { %v3825_v51 = vadd.f32 %v929_v4, %v707_v21  ;;  %v722_v30 = vadd.f32 %v2716_v25, %v2690_v42  ;;  %v939_v38 = vpop.f32.mrf.mxu0 }
 0x104   : > { %v716_v52 = vpop.f32.mrf.mxu1 }
 0x105   : > { %v3827_v59 = vadd.f32 %v2742_v24, %v722_v30  ;;  %v717_v63 = vadd.f32 %v716_v52, %v536_v44  ;;  %v2745_v2 = vpop.f32.mrf.mxu0 }
 0x106   : > { %v2719_v13 = vpop.f32.mrf.mxu1 }
 0x107   : > { %v3829_v3 = vadd.f32 %v939_v38, %v717_v63  ;;  %v732_v15 = vadd.f32 %v2719_v13, %v2693_v8  ;;  %v949_v16 = vpop.f32.mrf.mxu0 }
 0x108   : > { %v726_v23 = vpop.f32.mrf.mxu1 }
 0x109   : > { %v3831_v27 = vadd.f32 %v2745_v2, %v732_v15  ;;  %v727_v32 = vadd.f32 %v726_v23, %v546_v17  ;;  %v2748_v45 = vpop.f32.mrf.mxu0 }
 0x10a   : > { %v2722_v41 = vpop.f32.mrf.mxu1 }
 0x10b   : > { %v3833_v56 = vadd.f32 %v949_v16, %v727_v32  ;;  %v742_v46 = vadd.f32 %v2722_v41, %v2696_v20  ;;  %v959_v40 = vpop.f32.mrf.mxu0 }
 0x10c   : > { %v736_v6 = vpop.f32.mrf.mxu1 }
 0x10d   : > { %v3835_v9 = vadd.f32 %v2748_v45, %v742_v46  ;;  %v737_v62 = vadd.f32 %v736_v6, %v556_v29  ;;  %v2751_v36 = vpop.f32.mrf.mxu0 }
 0x10e   : > { %v2725_v5 = vpop.f32.mrf.mxu1 }
 0x10f   : > { %v3837_v14 = vadd.f32 %v959_v40, %v737_v62  ;;  %v752_v8 = vadd.f32 %v2725_v5, %v2699_v34  ;;  %v969_v19 = vpop.f32.mrf.mxu0 }
 0x110   : > { %v746_v22 = vpop.f32.mrf.mxu1 }
 0x111   : > { %v3839_v33 = vadd.f32 %v2751_v36, %v752_v8  ;;  %v747_v17 = vadd.f32 %v746_v22, %v566_v39  ;;  %v2754_v35 = vpop.f32.mrf.mxu0 }
 0x112   : > { %v2728_v42 = vpop.f32.mrf.mxu1 }
 0x113   : > { %v3841_v44 = vadd.f32 %v969_v19, %v747_v17  ;;  %v762_v20 = vadd.f32 %v2728_v42, %v2702_v43  ;;  %v979_v48 = vpop.f32.mrf.mxu0 }
 0x114   : > { %v756_v49 = vpop.f32.mrf.mxu1 }
 0x115   : > { %v3843_v53 = vadd.f32 %v2754_v35, %v762_v20  ;;  %v757_v29 = vadd.f32 %v756_v49, %v3813_v47  ;;  %v3846_v54 = vpop.f32.mrf.mxu0 }
 0x116   : > { %v2759_v55 = vpop.f32.mrf.mxu1 }
 0x117   : > { %v3848_v34 = vadd.f32 %v979_v48, %v757_v29  ;;  %v3850_v0 = vpop.f32.mrf.mxu0 }
 0x118   : > { %v1081_v1 = vpop.f32.mrf.mxu1 }
 0x119   : > { %v3852_v39 = vpop.f32.mrf.mxu0 }
 0x11a   : > { %v2762_v7 = vpop.f32.mrf.mxu1 }
 0x11b   : > { %v3854_v10 = vpop.f32.mrf.mxu0 }
 0x11c   : > { %v1091_v43 = vpop.f32.mrf.mxu1 }
 0x11d   : > { %v3856_v18 = vpop.f32.mrf.mxu0 }
 0x11e   : > { %v2765_v31 = vpop.f32.mrf.mxu1 }
 0x11f   : > { %v3858_v26 = vpop.f32.mrf.mxu0 }
 0x120   : > { %v1101_v47 = vpop.f32.mrf.mxu1 }
 0x121   : > { %v3860_v50 = vpop.f32.mrf.mxu0 }
 0x122   : > { %v2768_v57 = vpop.f32.mrf.mxu1 }
 0x123   : > { %v3862_v61 = vpop.f32.mrf.mxu0 }
 0x124   : > { %v1111_v4 = vpop.f32.mrf.mxu1 }
 0x125   : > { %v3864_v28 = vpop.f32.mrf.mxu0 }
 0x126   : > { %v3866_v21 = vpop.f32.mrf.mxu1 }
 0x127   : > { %v3868_v24 = vpop.f32.mrf.mxu0 }
 0x128   : > { %v3870_v25 = vpop.f32.mrf.mxu1 }
 0x129   : > { %v3872_v30 = vpop.f32.mrf.mxu0 }
 0x12a   : > { %v3874_v38 = vpop.f32.mrf.mxu1 }
 0x12b   : > { %v3876_v52 = vpop.f32.mrf.mxu0 }
 0x12c   : > { %v3878_v63 = vpop.f32.mrf.mxu1 }
 0x12d   : > { %v3880_v2 = vpop.f32.mrf.mxu0 }
 0x12e   : > { %v3882_v13 = vpop.f32.mrf.mxu1 }
 0x12f   : > { %v3884_v15 = vpop.f32.mrf.mxu0 }
 0x130   : > { %4159 = vst [vmem:[#allocation5_spill] sm:$0xff] %v3884_v15  ;;  %v3886_v16 = vpop.f32.mrf.mxu1 }
 0x131   : > { %v3888_v23 = vpop.f32.mrf.mxu0 }
 0x132   : > { %4160 = vst [vmem:[#allocation6_spill] sm:$0xff] %v3888_v23  ;;  %v3890_v32 = vpop.f32.mrf.mxu1 }
 0x133   : > { %v3892_v45 = vpop.f32.mrf.mxu0 }
 0x134   : > { %4161 = vst [vmem:[#allocation7_spill] sm:$0xff] %v3892_v45  ;;  %v3894_v41 = vpop.f32.mrf.mxu1 }
 0x135   : > { %v2837_v46 = vpop.f32.mrf.mxu0 }
 0x136   : > { %v2811_v40 = vpop.f32.mrf.mxu1 }
 0x137   : > { %v3896_v6 = vpop.f32.mrf.mxu0 }
 0x138   : > { %v1432_v62 = vpop.f32.mrf.mxu1 }
 0x139   : > { %v3898_v36 = vpop.f32.mrf.mxu0 }
 0x13a   : > { %v2814_v5 = vpop.f32.mrf.mxu1 }
 0x13b   : > { %v3900_v8 = vpop.f32.mrf.mxu0 }
 0x13c   : > { %4162 = vst [vmem:[#allocation8_spill] sm:$0xff] %v3900_v8  ;;  %v1442_v19 = vpop.f32.mrf.mxu1 }
 0x13d   : > { %v3902_v22 = vpop.f32.mrf.mxu0 }
 0x13e   : > { %4163 = vst [vmem:[#allocation9_spill] sm:$0xff] %v3902_v22  ;;  %v3904_v17 = vpop.f32.mrf.mxu1 }
 0x13f   : > { %v3906_v35 = vpop.f32.mrf.mxu0 }
 0x140   : > { %4164 = vst [vmem:[#allocation10_spill] sm:$0xff] %v3906_v35  ;;  %v3908_v42 = vpop.f32.mrf.mxu1 }
 0x141   : > { %v3910_v20 = vpop.f32.mrf.mxu0 }
 0x142   : > { %4165 = vst [vmem:[#allocation11_spill] sm:$0xff] %v3910_v20  ;;  %v3912_v48 = vpop.f32.mrf.mxu1  ;;  %v1161_v20 = vadd.f32 %v2759_v55, %v3815_v60  ;;  %v1164_v60 = vadd.f32 %v1101_v47, %v3825_v51 }
 0x143   : > { %4166 = vst [vmem:[#allocation12_spill] sm:$0xff] %v3912_v48  ;;  %v3914_v49 = vpop.f32.mrf.mxu0 }
 0x144   : > { %4167 = vst [vmem:[#allocation13_spill] sm:$0xff] %v3914_v49  ;;  %v3916_v29 = vpop.f32.mrf.mxu1 }
 0x145   : > { %4168 = vst [vmem:[#allocation14_spill] sm:$0xff] %v3916_v29  ;;  %v3918_v45 = vpop.f32.mrf.mxu0 }
 0x146   : > { %4169 = vst [vmem:[#allocation15_spill] sm:$0xff] %v3918_v45  ;;  %v3920_v8 = vpop.f32.mrf.mxu1  ;;  %v1160_v45 = vadd.f32 %v1081_v1, %v3817_v11  ;;  %v1167_v11 = vadd.f32 %v2768_v57, %v3827_v59  ;;  %v1171_v57 = vadd.f32 %v3874_v38, %v3835_v9  ;;  %v1175_v9 = vadd.f32 %v3890_v32, %v3843_v53 }
 0x147   : > { %4170 = vst [vmem:[#allocation16_spill] sm:$0xff] %v3920_v8  ;;  %v3922_v22 = vpop.f32.mrf.mxu0 }
 0x148   : > { %4171 = vst [vmem:[#allocation17_spill] sm:$0xff] %v3922_v22  ;;  %v3925_v23 = vpop.f32.mrf.mxu1  ;;  %v1163_v22 = vadd.f32 %v2762_v7, %v3819_v37  ;;  %v1336_v37 = vadd.f32 %v3850_v0, %v1160_v45 }
 0x149   : > { %4172 = vst [vmem:[#allocation18_spill] sm:$0xff] %v3925_v23  ;;  %v3927_v35 = vpop.f32.mrf.mxu0  ;;  %v1162_v23 = vadd.f32 %v1091_v43, %v3821_v58  ;;  %v1166_v58 = vadd.f32 %v1111_v4, %v3829_v3  ;;  %v1169_v3 = vadd.f32 %v3866_v21, %v3831_v27  ;;  %v1170_v4 = vadd.f32 %v3878_v63, %v3837_v14 }
 0x14a   : > { %4173 = vst [vmem:[#allocation19_spill] sm:$0xff] %v3927_v35  ;;  %v3929_v15 = vpop.f32.mrf.mxu1  ;;  %v1337_v35 = vadd.f32 %v3846_v54, %v1161_v20  ;;  %v1339_v54 = vadd.f32 %v3852_v39, %v1163_v22  ;;  %v1511_v0 = vadd.f32 %v1432_v62, %v1336_v37  ;;  %v1343_v39 = vadd.f32 %v3860_v50, %v1167_v11  ;;  %v4177_v62 = vld [vmem:[#allocation7_spill] sm:$0xff]  ;;  %v4180_v11 = vld [vmem:[#allocation10_spill] sm:$0xff] }
 0x14b   : > { %4174 = vst [vmem:[#allocation20_spill] sm:$0xff] %v3929_v15  ;;  %v3932_v48 = vpop.f32.mrf.mxu0  ;;  %v1165_v15 = vadd.f32 %v2765_v31, %v3823_v12  ;;  %v1338_v12 = vadd.f32 %v3854_v10, %v1162_v23  ;;  %v1340_v31 = vadd.f32 %v3858_v26, %v1164_v60  ;;  %v1168_v10 = vadd.f32 %v3870_v25, %v3833_v56 }
 0x14c   : > { %v3935_v49 = vpop.f32.mrf.mxu1  ;;  %v1512_v7 = vadd.f32 %v2811_v40, %v1337_v35  ;;  %v1342_v26 = vadd.f32 %v3862_v61, %v1166_v58  ;;  %v1173_v27 = vadd.f32 %v3882_v13, %v3839_v33  ;;  %v1172_v56 = vadd.f32 %v3886_v16, %v3841_v44  ;;  %v4175_v40 = vld [vmem:[#allocation5_spill] sm:$0xff]  ;;  %v4181_v58 = vld [vmem:[#allocation12_spill] sm:$0xff] }
 0x14d   : > { %v3938_v8 = vpop.f32.mrf.mxu0  ;;  %v1341_v59 = vadd.f32 %v3856_v18, %v1165_v15  ;;  %v1514_v15 = vadd.f32 %v2814_v5, %v1339_v54  ;;  %v1174_v14 = vadd.f32 %v3894_v41, %v3848_v34  ;;  %v1513_v25 = vadd.f32 %v1442_v19, %v1338_v12  ;;  %v4178_v19 = vld [vmem:[#allocation8_spill] sm:$0xff]  ;;  %v4179_v35 = vld [vmem:[#allocation9_spill] sm:$0xff]  ;;  %v4182_v54 = vld [vmem:[#allocation14_spill] sm:$0xff] }
 0x14e   : > { %v3942_v29 = vpop.f32.mrf.mxu1  ;;  %v1684_v21 = vadd.f32 %v2837_v46, %v1512_v7  ;;  %v1345_v61 = vadd.f32 %v3864_v28, %v1169_v3  ;;  %v1683_v63 = vadd.f32 %v3896_v6, %v1511_v0  ;;  %v1344_v45 = vadd.f32 %v3868_v24, %v1168_v10  ;;  %v4176_v6 = vld [vmem:[#allocation6_spill] sm:$0xff] }
 0x14f   : > { %v3947_v55 = vpop.f32.mrf.mxu0  ;;  %v1516_v33 = vadd.f32 %v3904_v17, %v1341_v59  ;;  %v1347_v44 = vadd.f32 %v3872_v30, %v1171_v57  ;;  %v1346_v16 = vadd.f32 %v3876_v52, %v1170_v4  ;;  %v1515_v53 = vadd.f32 %v3908_v42, %v1340_v31  ;;  %v4183_v59 = vld [vmem:[#allocation16_spill] sm:$0xff] }
 0x150   : > { %v3951_v1 = vpop.f32.mrf.mxu1  ;;  %v1349_v28 = vadd.f32 %v3880_v2, %v1173_v27  ;;  %v1686_v32 = vadd.f32 %v3898_v36, %v1514_v15  ;;  %v1348_v30 = vadd.f32 %v4175_v40, %v1172_v56  ;;  %v4004_v52 = vadd.f32 %v4176_v6, %v1175_v9  ;;  %v4189_v40 = vld [vmem:[#allocation17_spill] sm:$0xff] }
 0x151   : > { %v3955_v43 = vpop.f32.mrf.mxu0  ;;  %v4007_v5 = vadd.f32 %v4177_v62, %v1174_v14  ;;  %v1685_v22 = vadd.f32 %v4178_v19, %v1513_v25  ;;  %v1688_v42 = vadd.f32 %v4179_v35, %v1516_v33  ;;  %v1687_v37 = vadd.f32 %v4180_v11, %v1515_v53  ;;  %v4186_v33 = vld [vmem:[#allocation11_spill] sm:$0xff] }
 0x152   : > { %v3959_v51 = vpop.f32.mrf.mxu1  ;;  %v1518_v7 = vadd.f32 %v4181_v58, %v1343_v39  ;;  %v1517_v12 = vadd.f32 %v4182_v54, %v1342_v26  ;;  %v1520_v31 = vadd.f32 %v4183_v59, %v1345_v61  ;;  %v1521_v14 = vadd.f32 %v3935_v49, %v1346_v16  ;;  %v4190_v62 = vld [vmem:[#allocation19_spill] sm:$0xff] }
 0x153   : > { %v3967_v47 = vpop.f32.mrf.mxu0  ;;  %v1523_v11 = vadd.f32 %v3951_v1, %v1348_v30 }
 0x154   : > { %v3976_v18 = vpop.f32.mrf.mxu1 }
 0x155   : > { %v2889_v50 = vpop.f32.mrf.mxu0 }
 0x156   : > { %v2863_v38 = vpop.f32.mrf.mxu1 }
 0x157   : > { %v1860_v13 = vadd.f32 %v2863_v38, %v1684_v21  ;;  %v1955_v23 = vpop.f32.mrf.mxu0  ;;  %v4184_v21 = vld [vmem:[#allocation18_spill] sm:$0xff] }
 0x158   : > { %v1780_v34 = vpop.f32.mrf.mxu1  ;;  %v1519_v15 = vadd.f32 %v4184_v21, %v1344_v45 }
 0x159   : > { %v2035_v41 = vadd.f32 %v2889_v50, %v1860_v13  ;;  %v1859_v46 = vadd.f32 %v1780_v34, %v1683_v63  ;;  %v2892_v24 = vpop.f32.mrf.mxu0  ;;  %v4185_v50 = vld [vmem:[#allocation20_spill] sm:$0xff]  ;;  %v1690_v13 = vadd.f32 %v4186_v33, %v1518_v7 }
 0x15a   : > { %v2866_v17 = vpop.f32.mrf.mxu1  ;;  %v1522_v56 = vadd.f32 %v4185_v50, %v1347_v44  ;;  %v1691_v6 = vadd.f32 %v4189_v40, %v1519_v15 }
 0x15b   : > { %2052 = vst.msk [vmem:[%s3998_s10 + $0x8] sm:$0xff] %vm2050_vm4, %v2035_v41  ;;  %v2105_v2 = vmul.f32 %v2035_v41, %v2035_v41  ;;  %v2034_v36 = vadd.f32 %v1955_v23, %v1859_v46  ;;  %v1862_v20 = vadd.f32 %v2866_v17, %v1686_v32  ;;  %v1965_v60 = vpop.f32.mrf.mxu0  ;;  %v2068_v0 = vsel %vm2050_vm4, %v2035_v41, 0.0  ;;  %v4187_v23 = vld [vmem:[#allocation13_spill] sm:$0xff]  ;;  %v4188_v32 = vld [vmem:[#allocation15_spill] sm:$0xff] }
 0x15c   : > { %v1790_v3 = vpop.f32.mrf.mxu1  ;;  %v1689_v45 = vadd.f32 %v4187_v23, %v1517_v12  ;;  %v1692_v41 = vadd.f32 %v4188_v32, %v1520_v31  ;;  %v1694_v19 = vadd.f32 %v4190_v62, %v1522_v56 }
 0x15d   : > { %2051 = vst.msk [vmem:[%s3998_s10] sm:$0xff] %vm2050_vm4, %v2034_v36  ;;  %v2067_v10 = vsel %vm2050_vm4, %v2034_v36, 0.0  ;;  %v2104_v57 = vmul.f32 %v2034_v36, %v2034_v36  ;;  %v2037_v4 = vadd.f32 %v2892_v24, %v1862_v20  ;;  %v2895_v27 = vpop.f32.mrf.mxu0  ;;  %v1861_v9 = vadd.f32 %v1790_v3, %v1685_v22 }
 0x15e   : > { %v2069_v39 = vadd.f32 %v2068_v0, %v2067_v10  ;;  %v2869_v26 = vpop.f32.mrf.mxu1  ;;  %v2121_v25 = vsel %vm2050_vm4, %v2105_v2, 0.0  ;;  %v1524_v2 = vadd.f32 %v3942_v29, %v1349_v28 }
 0x15f   : > { %v2120_v38 = vsel %vm2050_vm4, %v2104_v57, 0.0  ;;  %2054 = vst.msk [vmem:[%s3998_s10 + $0x18] sm:$0xff] %vm2050_vm4, %v2037_v4  ;;  %v1864_v61 = vadd.f32 %v2869_v26, %v1688_v42  ;;  %v1975_v63 = vpop.f32.mrf.mxu0  ;;  %v2036_v44 = vadd.f32 %v1965_v60, %v1861_v9  ;;  %v2107_v49 = vmul.f32 %v2037_v4, %v2037_v4 }
 0x160   : > { %v2122_v53 = vadd.f32 %v2121_v25, %v2120_v38  ;;  %v1800_v34 = vpop.f32.mrf.mxu1  ;;  %v1693_v42 = vadd.f32 %v3932_v48, %v1521_v14  ;;  %v1696_v10 = vadd.f32 %v3938_v8, %v1524_v2 }
 0x161   : > { %v2039_v16 = vadd.f32 %v2895_v27, %v1864_v61  ;;  %v1863_v46 = vadd.f32 %v1800_v34, %v1687_v37  ;;  %v2898_v24 = vpop.f32.mrf.mxu0  ;;  %2053 = vst.msk [vmem:[%s3998_s10 + $0x10] sm:$0xff] %vm2050_vm4, %v2036_v44  ;;  %v2070_v22 = vsel %vm2050_vm4, %v2036_v44, 0.0  ;;  %v2106_v17 = vmul.f32 %v2036_v44, %v2036_v44 }
 0x162   : > { %v2872_v35 = vpop.f32.mrf.mxu1  ;;  %v2071_v36 = vadd.f32 %v2070_v22, %v2069_v39  ;;  %v2072_v37 = vsel %vm2050_vm4, %v2037_v4, 0.0  ;;  %v2125_v12 = vsel %vm2050_vm4, %v2107_v49, 0.0  ;;  %v1695_v61 = vadd.f32 %v3947_v55, %v1523_v11 }
 0x163   : > { %2056 = vst.msk [vmem:[%s3998_s10 + $0x28] sm:$0xff] %vm2050_vm4, %v2039_v16  ;;  %v2038_v20 = vadd.f32 %v1975_v63, %v1863_v46  ;;  %v1985_v60 = vpop.f32.mrf.mxu0  ;;  %v2123_v58 = vsel %vm2050_vm4, %v2106_v17, 0.0  ;;  %v1866_v7 = vadd.f32 %v2872_v35, %v1690_v13  ;;  %v2109_v31 = vmul.f32 %v2039_v16, %v2039_v16 }
 0x164   : > { %v1810_v54 = vpop.f32.mrf.mxu1  ;;  %v2124_v59 = vadd.f32 %v2123_v58, %v2122_v53  ;;  %v2073_v48 = vadd.f32 %v2072_v37, %v2071_v36  ;;  %v2076_v15 = vsel %vm2050_vm4, %v2039_v16, 0.0  ;;  %v1525_v53 = vadd.f32 %v3976_v18, %v4007_v5 }
 0x165   : > { %2055 = vst.msk [vmem:[%s3998_s10 + $0x20] sm:$0xff] %vm2050_vm4, %v2038_v20  ;;  %v2074_v29 = vsel %vm2050_vm4, %v2038_v20, 0.0  ;;  %v2901_v28 = vpop.f32.mrf.mxu0  ;;  %v2108_v3 = vmul.f32 %v2038_v20, %v2038_v20  ;;  %v2041_v0 = vadd.f32 %v2898_v24, %v1866_v7  ;;  %v1865_v1 = vadd.f32 %v1810_v54, %v1689_v45 }
 0x166   : > { %v2875_v30 = vpop.f32.mrf.mxu1  ;;  %v2075_v57 = vadd.f32 %v2074_v29, %v2073_v48  ;;  %v2126_v4 = vadd.f32 %v2125_v12, %v2124_v59  ;;  %v2129_v63 = vsel %vm2050_vm4, %v2109_v31, 0.0  ;;  %v1526_v45 = vadd.f32 %v3959_v51, %v4004_v52 }
 0x167   : > { %v1868_v27 = vadd.f32 %v2875_v30, %v1692_v41  ;;  %v1995_v21 = vpop.f32.mrf.mxu0  ;;  %v2127_v50 = vsel %vm2050_vm4, %v2108_v3, 0.0  ;;  %2058 = vst.msk [vmem:[%s3998_s10 + $0x38] sm:$0xff] %vm2050_vm4, %v2041_v0  ;;  %v2111_v56 = vmul.f32 %v2041_v0, %v2041_v0  ;;  %v2040_v39 = vadd.f32 %v1985_v60, %v1865_v1 }
 0x168   : > { %v1820_v9 = vpop.f32.mrf.mxu1  ;;  %v2128_v26 = vadd.f32 %v2127_v50, %v2126_v4  ;;  %v2077_v14 = vadd.f32 %v2076_v15, %v2075_v57  ;;  %v2080_v32 = vsel %vm2050_vm4, %v2041_v0, 0.0  ;;  %v1698_v60 = vadd.f32 %v3955_v43, %v1526_v45 }
 0x169   : > { %v2043_v25 = vadd.f32 %v2901_v28, %v1868_v27  ;;  %v1867_v38 = vadd.f32 %v1820_v9, %v1691_v6  ;;  %v2904_v8 = vpop.f32.mrf.mxu0  ;;  %2057 = vst.msk [vmem:[%s3998_s10 + $0x30] sm:$0xff] %vm2050_vm4, %v2040_v39  ;;  %v2078_v33 = vsel %vm2050_vm4, %v2040_v39, 0.0  ;;  %v2110_v13 = vmul.f32 %v2040_v39, %v2040_v39 }
 0x16a   : > { %v2878_v23 = vpop.f32.mrf.mxu1  ;;  %v2079_v44 = vadd.f32 %v2078_v33, %v2077_v14  ;;  %v2130_v34 = vadd.f32 %v2129_v63, %v2128_v26  ;;  %v2133_v24 = vsel %vm2050_vm4, %v2111_v56, 0.0 }
 0x16b   : > { %2060 = vst.msk [vmem:[%s3998_s10 + $0x48] sm:$0xff] %vm2050_vm4, %v2043_v25  ;;  %v2005_v55 = vpop.f32.mrf.mxu0  ;;  %v2131_v41 = vsel %vm2050_vm4, %v2110_v13, 0.0  ;;  %v2042_v49 = vadd.f32 %v1995_v21, %v1867_v38  ;;  %v1870_v16 = vadd.f32 %v2878_v23, %v1694_v19  ;;  %v2113_v18 = vmul.f32 %v2043_v25, %v2043_v25 }
 0x16c   : > { %v1830_v46 = vpop.f32.mrf.mxu1  ;;  %v2132_v40 = vadd.f32 %v2131_v41, %v2130_v34  ;;  %v2081_v51 = vadd.f32 %v2080_v32, %v2079_v44  ;;  %v2084_v11 = vsel %vm2050_vm4, %v2043_v25, 0.0 }
 0x16d   : > { %v1869_v52 = vadd.f32 %v1830_v46, %v1693_v42  ;;  %v2907_v6 = vpop.f32.mrf.mxu0  ;;  %2059 = vst.msk [vmem:[%s3998_s10 + $0x40] sm:$0xff] %vm2050_vm4, %v2042_v49  ;;  %v2082_v5 = vsel %vm2050_vm4, %v2042_v49, 0.0  ;;  %v2112_v62 = vmul.f32 %v2042_v49, %v2042_v49  ;;  %v2045_v22 = vadd.f32 %v2904_v8, %v1870_v16 }
 0x16e   : > { %v2881_v17 = vpop.f32.mrf.mxu1  ;;  %v2083_v35 = vadd.f32 %v2082_v5, %v2081_v51  ;;  %v2134_v2 = vadd.f32 %v2133_v24, %v2132_v40  ;;  %v1697_v42 = vadd.f32 %v3967_v47, %v1525_v53  ;;  %v2137_v48 = vsel %vm2050_vm4, %v2113_v18, 0.0 }
 0x16f   : > { %v2044_v19 = vadd.f32 %v2005_v55, %v1869_v52  ;;  %v1872_v36 = vadd.f32 %v2881_v17, %v1696_v10  ;;  %v2015_v20 = vpop.f32.mrf.mxu0  ;;  %v2135_v37 = vsel %vm2050_vm4, %v2112_v62, 0.0  ;;  %2062 = vst.msk [vmem:[%s3998_s10 + $0x58] sm:$0xff] %vm2050_vm4, %v2045_v22  ;;  %v2115_v43 = vmul.f32 %v2045_v22, %v2045_v22 }
 0x170   : > { %v1840_v58 = vpop.f32.mrf.mxu1  ;;  %v2136_v7 = vadd.f32 %v2135_v37, %v2134_v2  ;;  %v2085_v54 = vadd.f32 %v2084_v11, %v2083_v35  ;;  %v2088_v10 = vsel %vm2050_vm4, %v2045_v22, 0.0 }
 0x171   : > { %2061 = vst.msk [vmem:[%s3998_s10 + $0x50] sm:$0xff] %vm2050_vm4, %v2044_v19  ;;  %v2086_v12 = vsel %vm2050_vm4, %v2044_v19, 0.0  ;;  %v2114_v59 = vmul.f32 %v2044_v19, %v2044_v19  ;;  %v2047_v29 = vadd.f32 %v2907_v6, %v1872_v36  ;;  %v1871_v47 = vadd.f32 %v1840_v58, %v1695_v61  ;;  %v2910_v30 = vpop.f32.mrf.mxu0 }
 0x172   : > { %v2884_v28 = vpop.f32.mrf.mxu1  ;;  %v2087_v31 = vadd.f32 %v2086_v12, %v2085_v54  ;;  %v2138_v3 = vadd.f32 %v2137_v48, %v2136_v7  ;;  %v2141_v56 = vsel %vm2050_vm4, %v2115_v43, 0.0 }
 0x173   : > { %v2139_v0 = vsel %vm2050_vm4, %v2114_v59, 0.0  ;;  %v1874_v1 = vadd.f32 %v2884_v28, %v1698_v60  ;;  %2064 = vst.msk [vmem:[%s3998_s10 + $0x68] sm:$0xff] %vm2050_vm4, %v2047_v29  ;;  %v2046_v57 = vadd.f32 %v2015_v20, %v1871_v47  ;;  %v2117_v39 = vmul.f32 %v2047_v29, %v2047_v29  ;;  %v2025_v38 = vpop.f32.mrf.mxu0 }
 0x174   : > { %v1850_v4 = vpop.f32.mrf.mxu1  ;;  %v2140_v27 = vadd.f32 %v2139_v0, %v2138_v3  ;;  %v2089_v21 = vadd.f32 %v2088_v10, %v2087_v31  ;;  %v2092_v8 = vsel %vm2050_vm4, %v2047_v29, 0.0 }
 0x175   : > { %v2049_v15 = vadd.f32 %v2910_v30, %v1874_v1  ;;  %v1873_v50 = vadd.f32 %v1850_v4, %v1697_v42  ;;  %2063 = vst.msk [vmem:[%s3998_s10 + $0x60] sm:$0xff] %vm2050_vm4, %v2046_v57  ;;  %v2090_v9 = vsel %vm2050_vm4, %v2046_v57, 0.0  ;;  %v2116_v26 = vmul.f32 %v2046_v57, %v2046_v57 }
 0x176   : > { %v2091_v14 = vadd.f32 %v2090_v9, %v2089_v21  ;;  %v2142_v25 = vadd.f32 %v2141_v56, %v2140_v27  ;;  %v2145_v23 = vsel %vm2050_vm4, %v2117_v39, 0.0 }
 0x177   : > { %2066 = vst.msk [vmem:[%s3998_s10 + $0x78] sm:$0xff] %vm2050_vm4, %v2049_v15  ;;  %v2143_v61 = vsel %vm2050_vm4, %v2116_v26, 0.0  ;;  %v2048_v63 = vadd.f32 %v2025_v38, %v1873_v50  ;;  %v2119_v45 = vmul.f32 %v2049_v15, %v2049_v15  ;;  %v2096_v32 = vsel %vm2050_vm4, %v2049_v15, 0.0 }
 0x178   : > { %v2144_v33 = vadd.f32 %v2143_v61, %v2142_v25  ;;  %v2093_v13 = vadd.f32 %v2092_v8, %v2091_v14 }
 0x179   : > { %2065 = vst.msk [vmem:[%s3998_s10 + $0x70] sm:$0xff] %vm2050_vm4, %v2048_v63  ;;  %v2094_v53 = vsel %vm2050_vm4, %v2048_v63, 0.0  ;;  %v2118_v44 = vmul.f32 %v2048_v63, %v2048_v63  ;;  %v2149_v46 = vsel %vm2050_vm4, %v2119_v45, 0.0  ;;  %s2993_s10 = scalar_lea.vmem %s2992_s13, 256 }
 0x17a   : > { %v2095_v34 = vadd.f32 %v2094_v53, %v2093_v13  ;;  %v2146_v55 = vadd.f32 %v2145_v23, %v2144_v33  ;;  %p2995_p7 = scmp.lt.s32.totalorder %s2993_s10, %s2987_s19 }
 0x17b   : > { %v2147_v41 = vsel %vm2050_vm4, %v2118_v44, 0.0 }
 0x17c   : > { %v2097_v49 = vadd.f32 %v2096_v32, %v2095_v34  ;;  %v2148_v16 = vadd.f32 %v2147_v41, %v2146_v55  ;;  %p2996_p9 = por %p2995_p7, %p2994_p6 }
 0x17e   : > { %v2098_v24 = vrot.slane %v2097_v49, 4  ;;  %v2150_v40 = vadd.f32 %v2149_v46, %v2148_v16  ;;  %p2997_p10 = pnand %p2996_p9, %p2990_p5 }
 0x180   : > { %v2099_v51 = vadd.f32 %v2098_v24, %v2097_v49  ;;  %v2151_v52 = vrot.slane %v2150_v40, 4 }
 0x182   : > { %v2100_v6 = vrot.slane %v2099_v51, 2  ;;  %v2152_v18 = vadd.f32 %v2151_v52, %v2150_v40 }
 0x184   : > { %v2101_v5 = vadd.f32 %v2100_v6, %v2099_v51  ;;  %v2153_v62 = vrot.slane %v2152_v18, 2 }
 0x186   : > { %v2102_v22 = vrot.slane %v2101_v5, 1  ;;  %v2154_v17 = vadd.f32 %v2153_v62, %v2152_v18 }
 0x188   : > { %v2155_v35 = vrot.slane %v2154_v17, 1  ;;  %v2103_v2 = vadd.f32 %v2102_v22, %v2101_v5 }
 0x18a   : > { %v2156_v19 = vadd.f32 %v2155_v35, %v2154_v17 }
 0x18c   : > { %v2158_v36 = vsel %vm2157_vm5, %v2103_v2, %v2156_v19 }
 0x18d   : > { %v2160_v20 = vsel %vm2159_vm6, %v2158_v36, 0.0 }
 0x18e   : > { %2161 = vst.msk [vmem:[%s269_s27] sm:$0xff] %vm2050_vm4, %v2160_v20 }
 0x18f   : > { %3000 = shalt.err (!%p2997_p10)
}
 0x190   : > { %s3001_s24 = scalar_lea.hbm %s4104_s23, 128  ;;  %s3005_s6 = scalar_lea.hbm %s4155_s4, 512 }
 0x191   : > { %p3002_p11 = scmp.ne.s32.totalorder %s4104_s23, %s3001_s24  ;;  %p3006_p0 = scmp.lt.s32.totalorder %s4104_s23, %s4155_s4 }
 0x192   : > { %p3007_p1 = scmp.lt.s32.totalorder %s3005_s6, %s3001_s24 }
 0x193   : > { %p3003_p12 = pnand %p3002_p11, %p3158_p3 }
 0x194   : > { %p3008_p2 = por %p3007_p1, %p3006_p0 }
 0x195   : > { %p3004_p13 = pneg %p3003_p12 }
 0x197   : > { %p3009_p4 = pnand %p3008_p2, %p3004_p13 }
 0x199   : > { %3012 = shalt.err (!%p3009_p4)
}
 0x19a   : > { %2916 = dma.vmem_to_hbm [thread:$0]  (%p3158_p3), %s2191_s8, 128, %s4104_s23, %s2172_s18  }
 0x19b PF: > { %p2922_p5 = scmp.ge.s32.totalorder %s3079_s22, 2  ;;  %s2214_s9 = sand.u32 1, %s3051_s15  }
 0x19c   : > { %s2215_s11 = scalar_lea.sflag [#allocation3], %s2214_s9 }
 0x19d   : > { %p2919_p6 = pnand %p2922_p5, %p3167_p8 }
 0x19f   : > { %p2920_p7 = pneg %p2919_p6 }
 0x1a1   : > { %3046 = dma.done.wait (%p2920_p7), %s2215_s11, 128  }
 0x1a2   : > { %3048 = vsyncadd (%p2920_p7), %s2215_s11, 4294967168  ;;  %s18_s22 = sadd.s32 1, %s3079_s22   ;;  %s4191_s15 = smov %s3055_s16 }
 0x1a3   : > { %p15_p9 = scmp.ge.s32.totalorder %s18_s22, 6   ;;  %s4192_s16 = smov %s3059_s17 }
 0x1a4   : > { %s4193_s17 = smov %s3176_s7  ;;  %s4194_s18 = smov %s3071_s20 }
 0x1a5   : > { %s4195_s19 = smov %s3075_s21  ;;  %s4196_s20 = smov %s4199_s25 }
 0x1a6   : > { %s4197_s21 = smov %s4203_s26  ;;  %17 = sbr.rel (!%p15_p9) target bundleno = 5 (0x5), region = 90 }
 0x1ab   :  { %2220 = vsyncpa [#allocation3], 1 }
 0x1ac   :  { %2222 = vsyncpa [#allocation3 + $0x1], 1 }

</bundles_post_ra>
